<compile_context>
chip_gen: v6e
topology: v6e:2x2x1
jax: 0.10.0
libtpu: 0.0.40
codegen_flags: <defaults>
</compile_context>

<pallas_src>
import functools
import math

import numpy as np
import jax
import jax.numpy as jnp
from jax import lax
from jax.experimental import pallas as pl
from jax.experimental.pallas import tpu as pltpu


def hf_kernel(kin_ref, vint_ref, uho_ref, wfy0_ref, out_ref,
              *, nmax, delx, pfac, ffac, itermax):
    """Full Hartree-Fock self-consistency loop in one kernel invocation."""
    kin = kin_ref[...]                      # (Nx, Nx)
    uho = uho_ref[...]                      # (1, Nx)
    nvint = (-delx) * vint_ref[...]         # -delx * Vint  (iteration-invariant)
    nrows, nx = wfy0_ref.shape
    # hoisted (loop-invariant) row index for merging updated rows
    row_idx = lax.broadcasted_iota(jnp.int32, (nrows, nx), 0)

    def sc_step(wfy):
        """One HF self-consistency step.  Returns the post-update wavefunctions
        plus the pre-update quantities needed for the energy bookkeeping."""
        # --- densities ----------------------------------------------------
        hf_den = jnp.sum(wfy * wfy, axis=0, keepdims=True)                 # (1, Nx)
        hf_den_mat = lax.dot_general(wfy, wfy, (((0,), (0,)), ((), ())),
                                     preferred_element_type=jnp.float32)  # (Nx, Nx)

        # --- mean field (diagonal handled elementwise, never materialised) -
        # Udir[j] = delx * sum_k Vint[j,k] * hf_den[k]
        udir = -lax.dot_general(hf_den, nvint, (((1,), (1,)), ((), ())),
                                preferred_element_type=jnp.float32)        # (1, Nx)
        u_off = nvint * hf_den_mat        # -delx*Vint*den_mat (incl. its own diagonal)
        u_diag = udir + uho               # extra diagonal contribution
        base = kin + u_off                # H minus the extra diagonal

        # wfh[n,:] = H @ wfy[n,:]
        wfh = lax.dot_general(wfy, base, (((1,), (1,)), ((), ())),
                              preferred_element_type=jnp.float32) + wfy * u_diag

        # --- damped step + classical Gram-Schmidt (sequential over states) -
        new_rows = []
        for ieig in range(nmax):
            wf0 = wfy[ieig:ieig + 1, :]                 # pre-update state (1, Nx)
            wfb = wf0 - wfh[ieig:ieig + 1, :] * pfac
            nrm = jnp.sum(wfb * wfb) * delx
            wff = wfb * lax.rsqrt(nrm)
            wfo = jnp.zeros_like(wff)
            for jeig in range(ieig):                    # project on updated states
                wj = new_rows[jeig]
                wfo = wfo + wj * (jnp.sum(wj * wff) * delx)
            wff = wff - wfo
            nrm2 = jnp.sum(wff * wff) * delx
            wff = wff * (1.0 / nrm2)   # (sic) reference divides by norm, not sqrt(norm)
            new_rows.append(ffac * wff + (1.0 - ffac) * wf0)

        # merge updated rows into the (nrows, Nx) carry (single-vreg selects)
        wfy_new = wfy
        for ieig in range(nmax):
            wfy_new = jnp.where(row_idx == ieig, new_rows[ieig], wfy_new)
        return wfy_new, wfh, hf_den, u_off, u_diag

    # --- first itermax-1 iterations: wavefunction update only --------------
    wfy = lax.fori_loop(0, itermax - 1,
                        lambda it, w: sc_step(w)[0],
                        wfy0_ref[...])

    # --- final iteration with energy bookkeeping ----------------------------
    wfy_new, wfh, hf_den, u_off, u_diag = sc_step(wfy)

    # single-particle energies from the pre-update wavefunctions (as in reference)
    spe = delx * jnp.sum(wfy * wfh, axis=1, keepdims=True)   # (nrows, 1); padded rows = 0
    esum0hf = jnp.sum(spe)

    # kinetic / potential energies from the post-update wavefunctions
    kw = lax.dot_general(wfy_new, kin, (((1,), (1,)), ((), ())),
                         preferred_element_type=jnp.float32)
    ekin0hf = delx * jnp.sum(wfy_new * kw)
    uw = (lax.dot_general(wfy_new, u_off, (((1,), (1,)), ((), ())),
                          preferred_element_type=jnp.float32)
          + wfy_new * u_diag)
    epot0hf = delx * jnp.sum(wfy_new * uw)

    eho = jnp.sum(hf_den * uho) * delx / 2.0
    enerhfp = (esum0hf + ekin0hf) / 2.0 + eho
    epot0hf = epot0hf - 2.0 * eho
    enerhf = esum0hf - epot0hf / 2.0

    # lane-dense scalar output: [enerhf, enerhfp, ekin0hf, eho, epot0hf, esum0hf, 0, ...]
    lane = lax.broadcasted_iota(jnp.int32, (1, out_ref.shape[1]), 1)
    evec = (jnp.where(lane == 0, enerhf, 0.0)
            + jnp.where(lane == 1, enerhfp, 0.0)
            + jnp.where(lane == 2, ekin0hf, 0.0)
            + jnp.where(lane == 3, eho, 0.0)
            + jnp.where(lane == 4, epot0hf, 0.0)
            + jnp.where(lane == 5, esum0hf, 0.0))
    out_ref[...] = evec


def hf_forward(kin, vint, uho, wfy0, *, nmax, delx, pfac, ffac, itermax):
    nx = kin.shape[0]
    nrows = wfy0.shape[0]
    kern = functools.partial(hf_kernel, nmax=nmax, delx=delx, pfac=pfac,
                             ffac=ffac, itermax=itermax)
    out = pl.pallas_call(
        kern,
        out_shape=jax.ShapeDtypeStruct((1, nx), jnp.float32),
        grid_spec=pltpu.PrefetchScalarGridSpec(
            num_scalar_prefetch=0,
            grid=(1,),
            in_specs=[pl.BlockSpec((nx, nx), lambda i: (0, 0)),      # kin_mat
                      pl.BlockSpec((nx, nx), lambda i: (0, 0)),      # Vint
                      pl.BlockSpec((1, nx), lambda i: (0, 0)),       # U_HO
                      pl.BlockSpec((nrows, nx), lambda i: (0, 0))],  # wfy (init)
            out_specs=pl.BlockSpec((1, nx), lambda i: (0, 0))),
        compiler_params=pltpu.CompilerParams(
            dimension_semantics=("arbitrary",)),
    )(kin, vint, uho, wfy0)
    e = out[0]
    # (enerhf, enerhfp, ekin0hf, eho, epot0hf, esum0hf)
    return e[0], e[1], e[2], e[3], e[4], e[5]


def build_hf_operands(A=2, xL=6.0, Nx=128, V0=-2.0, s=0.5):
    """Deterministic recreation of HFsolver.__init__ operands (float32)."""
    delx = 2.0 * xL / Nx
    xx = (delx * (np.arange(Nx) - Nx / 2.0)).astype(np.float32)
    delp = 2.0 * math.pi / (2.0 * xL)
    pp = (delp * (np.arange(Nx) - Nx / 2.0)).astype(np.float32)

    # der2 / kin_mat:  cder2[i,j] = sum_p exp(1j*(xj-xi)*p) * p^2  (real part)
    dmat = xx[None, :] - xx[:, None]                                  # (i,j) = xj - xi
    cder2_real = np.einsum('ijp,p->ij',
                           np.cos(dmat[:, :, None] * pp[None, None, :]),
                           pp ** 2)
    der2 = -1.0 * cder2_real * delx * delp / (2.0 * math.pi)
    kin = (-der2 / 2.0).astype(np.float32)

    u_ho = (xx ** 2 / 2.0).astype(np.float32)[None, :]                # (1, Nx)

    x1 = xx[:, None]
    x2 = xx[None, :]
    vint = (V0 * (2.0 * math.pi) ** (-0.5) / s
            * np.exp(-(x1 - x2) ** 2 / 2.0 / s ** 2)).astype(np.float32)

    pfac = float(1.0 / abs(kin.max()))
    ffac = 0.4

    def wfho(n, x):
        nfac = math.factorial(n)
        norm = (2 ** n * nfac) ** (-0.5) / math.pi ** 0.25
        if n == 0:
            hn = np.ones_like(x)
        elif n == 1:
            hn = 2.0 * x
        else:
            hm2 = np.ones_like(x)
            hm1 = 2.0 * x
            for m in range(2, n + 1):
                hmx = 2.0 * x * hm1 - 2.0 * (m - 1) * hm2
                hm2, hm1 = hm1, hmx
            hn = hmx
        return norm * np.exp(-x ** 2 / 2.0) * hn

    # eigenstates as rows, zero-padded to 8 sublanes (one f32 vreg)
    wfy = np.zeros((8, Nx), dtype=np.float32)
    for n in range(A):
        wfy[n, :] = wfho(n, xx)

    return (jnp.asarray(kin), jnp.asarray(vint), jnp.asarray(u_ho),
            jnp.asarray(wfy), float(delx), pfac, ffac)


if __name__ == "__main__":
    # forward() takes no tensor inputs; key kept for the deterministic-inputs convention.
    key = jax.random.PRNGKey(0)
    del key

    A, xL, Nx, V0, s = 2, 6.0, 128, -2.0, 0.5
    itermax = 50   # small iteration count for the demo run

    kin, vint, u_ho, wfy0, delx, pfac, ffac = build_hf_operands(
        A=A, xL=xL, Nx=Nx, V0=V0, s=s)

    # TODO(synk): tqdm progress bar and python-side diagnostic attributes
    # (esum0hf_array history, diffs, xa, x2_av) are host bookkeeping with no
    # kernel equivalent; only the returned energies are produced.
    result = hf_forward(kin, vint, u_ho, wfy0, nmax=A, delx=delx,
                        pfac=pfac, ffac=ffac, itermax=itermax)
    jax.block_until_ready(result)
    print("KERNEL_OK")
</pallas_src>

<mosaic_0001>
module attributes {stable_mosaic.version = 11 : i64} {
  func.func @hf_kernel(%arg0: i32, %arg1: memref<128x128xf32, #tpu.memory_space<vmem>>, %arg2: memref<128x128xf32, #tpu.memory_space<vmem>>, %arg3: memref<1x128xf32, #tpu.memory_space<vmem>>, %arg4: memref<8x128xf32, #tpu.memory_space<vmem>>, %arg5: memref<1x128xf32, #tpu.memory_space<vmem>>) attributes {dimension_semantics = [#tpu.dimension_semantics<arbitrary>], iteration_bounds = array<i64: 1>, scalar_prefetch = 0 : i64, scratch_operands = 0 : i64, tpu.core_type = #tpu.core_type<tc>, window_params = [{pipeline_mode = #tpu.pipeline_mode<synchronous>, transform_indices = @transform_0, window_bounds = array<i64: 128, 128>}, {pipeline_mode = #tpu.pipeline_mode<synchronous>, transform_indices = @transform_1, window_bounds = array<i64: 128, 128>}, {pipeline_mode = #tpu.pipeline_mode<synchronous>, transform_indices = @transform_2, window_bounds = array<i64: 1, 128>}, {pipeline_mode = #tpu.pipeline_mode<synchronous>, transform_indices = @transform_3, window_bounds = array<i64: 8, 128>}, {pipeline_mode = #tpu.pipeline_mode<synchronous>, transform_indices = @transform_4, window_bounds = array<i64: 1, 128>}]} {
    %c0 = arith.constant 0 : index
    %c0_0 = arith.constant 0 : index
    %0 = vector.load %arg1[%c0, %c0_0] : memref<128x128xf32, #tpu.memory_space<vmem>>, vector<128x128xf32>
    %c0_1 = arith.constant 0 : index
    %c0_2 = arith.constant 0 : index
    %1 = vector.load %arg3[%c0_1, %c0_2] : memref<1x128xf32, #tpu.memory_space<vmem>>, vector<1x128xf32>
    %c0_3 = arith.constant 0 : index
    %c0_4 = arith.constant 0 : index
    %2 = vector.load %arg2[%c0_3, %c0_4] : memref<128x128xf32, #tpu.memory_space<vmem>>, vector<128x128xf32>
    %cst = arith.constant -9.375000e-02 : f32
    %3 = vector.broadcast %cst : f32 to vector<128x128xf32>
    %4 = arith.mulf %3, %2 : vector<128x128xf32>
    %5 = tpu.iota {dimensions = array<i32: 0>} : vector<8x128xi32>
    %c0_5 = arith.constant 0 : index
    %c0_6 = arith.constant 0 : index
    %6 = vector.load %arg4[%c0_5, %c0_6] : memref<8x128xf32, #tpu.memory_space<vmem>>, vector<8x128xf32>
    %c0_i32 = arith.constant 0 : i32
    %c49_i32 = arith.constant 49 : i32
    %7 = arith.addi %c0_i32, %c49_i32 : i32
    %c1_i32 = arith.constant 1 : i32
    %8 = scf.for %arg6 = %c0_i32 to %7 step %c1_i32 iter_args(%arg7 = %6) -> (vector<8x128xf32>)  : i32 {
      %179 = arith.mulf %arg7, %arg7 : vector<8x128xf32>
      %cst_59 = arith.constant dense<0.000000e+00> : vector<128xf32>
      %180 = vector.multi_reduction <add>, %179, %cst_59 [0] : vector<8x128xf32> to vector<128xf32>
      %181 = vector.shape_cast %180 : vector<128xf32> to vector<1x128xf32>
      %cst_60 = arith.constant dense<0.000000e+00> : vector<128x128xf32>
      %182 = tpu.matmul %arg7, %arg7, %cst_60 {dimension_numbers = #tpu.dot_dimension_numbers<[0], [0], [1], [1], [0, 1, 1, 1], [], []>} : vector<8x128xf32>, vector<8x128xf32>, vector<128x128xf32> -> vector<128x128xf32>
      %cst_61 = arith.constant dense<0.000000e+00> : vector<1x128xf32>
      %183 = tpu.matmul %181, %4, %cst_61 {dimension_numbers = #tpu.dot_dimension_numbers<[1], [1], [0], [0], [0, 0, 1, 0], [], []>} : vector<1x128xf32>, vector<128x128xf32>, vector<1x128xf32> -> vector<1x128xf32>
      %cst_62 = arith.constant 0.000000e+00 : f32
      %184 = vector.broadcast %cst_62 : f32 to vector<1x128xf32>
      %185 = arith.subf %184, %183 : vector<1x128xf32>
      %186 = arith.mulf %4, %182 : vector<128x128xf32>
      %187 = arith.addf %185, %1 : vector<1x128xf32>
      %188 = arith.addf %0, %186 : vector<128x128xf32>
      %cst_63 = arith.constant dense<0.000000e+00> : vector<8x128xf32>
      %189 = tpu.matmul %arg7, %188, %cst_63 {dimension_numbers = #tpu.dot_dimension_numbers<[1], [1], [0], [0], [0, 0, 1, 0], [], []>} : vector<8x128xf32>, vector<128x128xf32>, vector<8x128xf32> -> vector<8x128xf32>
      %190 = vector.broadcast %187 : vector<1x128xf32> to vector<8x128xf32>
      %191 = arith.mulf %arg7, %190 : vector<8x128xf32>
      %192 = arith.addf %189, %191 : vector<8x128xf32>
      %193 = vector.extract_strided_slice %arg7 {offsets = [0, 0], sizes = [1, 128], strides = [1, 1]} : vector<8x128xf32> to vector<1x128xf32>
      %194 = vector.extract_strided_slice %192 {offsets = [0, 0], sizes = [1, 128], strides = [1, 1]} : vector<8x128xf32> to vector<1x128xf32>
      %cst_64 = arith.constant 0.00534245791 : f32
      %195 = vector.broadcast %cst_64 : f32 to vector<1x128xf32>
      %196 = arith.mulf %194, %195 : vector<1x128xf32>
      %197 = arith.subf %193, %196 : vector<1x128xf32>
      %198 = arith.mulf %197, %197 : vector<1x128xf32>
      %199 = vector.shape_cast %198 : vector<1x128xf32> to vector<1x1x128xf32>
      %cst_65 = arith.constant dense<0.000000e+00> : vector<1xf32>
      %200 = vector.multi_reduction <add>, %199, %cst_65 [1, 2] : vector<1x1x128xf32> to vector<1xf32>
      %201 = vector.shape_cast %200 : vector<1xf32> to vector<1x1x1xf32>
      %202 = vector.extract %201[0, 0, 0] : f32 from vector<1x1x1xf32>
      %cst_66 = arith.constant 9.375000e-02 : f32
      %203 = arith.mulf %202, %cst_66 : f32
      %204 = math.rsqrt %203 : f32
      %205 = vector.broadcast %204 : f32 to vector<1x128xf32>
      %206 = arith.mulf %197, %205 : vector<1x128xf32>
      %cst_67 = arith.constant 0.000000e+00 : f32
      %207 = vector.broadcast %cst_67 : f32 to vector<1x128xf32>
      %208 = arith.subf %206, %207 : vector<1x128xf32>
      %209 = arith.mulf %208, %208 : vector<1x128xf32>
      %210 = vector.shape_cast %209 : vector<1x128xf32> to vector<1x1x128xf32>
      %cst_68 = arith.constant dense<0.000000e+00> : vector<1xf32>
      %211 = vector.multi_reduction <add>, %210, %cst_68 [1, 2] : vector<1x1x128xf32> to vector<1xf32>
      %212 = vector.shape_cast %211 : vector<1xf32> to vector<1x1x1xf32>
      %213 = vector.extract %212[0, 0, 0] : f32 from vector<1x1x1xf32>
      %cst_69 = arith.constant 9.375000e-02 : f32
      %214 = arith.mulf %213, %cst_69 : f32
      %cst_70 = arith.constant 1.000000e+00 : f32
      %215 = arith.divf %cst_70, %214 : f32
      %216 = vector.broadcast %215 : f32 to vector<1x128xf32>
      %217 = arith.mulf %208, %216 : vector<1x128xf32>
      %cst_71 = arith.constant 4.000000e-01 : f32
      %218 = vector.broadcast %cst_71 : f32 to vector<1x128xf32>
      %219 = arith.mulf %218, %217 : vector<1x128xf32>
      %cst_72 = arith.constant 6.000000e-01 : f32
      %220 = vector.broadcast %cst_72 : f32 to vector<1x128xf32>
      %221 = arith.mulf %220, %193 : vector<1x128xf32>
      %222 = arith.addf %219, %221 : vector<1x128xf32>
      %223 = vector.extract_strided_slice %arg7 {offsets = [1, 0], sizes = [1, 128], strides = [1, 1]} : vector<8x128xf32> to vector<1x128xf32>
      %224 = vector.extract_strided_slice %192 {offsets = [1, 0], sizes = [1, 128], strides = [1, 1]} : vector<8x128xf32> to vector<1x128xf32>
      %cst_73 = arith.constant 0.00534245791 : f32
      %225 = vector.broadcast %cst_73 : f32 to vector<1x128xf32>
      %226 = arith.mulf %224, %225 : vector<1x128xf32>
      %227 = arith.subf %223, %226 : vector<1x128xf32>
      %228 = arith.mulf %227, %227 : vector<1x128xf32>
      %229 = vector.shape_cast %228 : vector<1x128xf32> to vector<1x1x128xf32>
      %cst_74 = arith.constant dense<0.000000e+00> : vector<1xf32>
      %230 = vector.multi_reduction <add>, %229, %cst_74 [1, 2] : vector<1x1x128xf32> to vector<1xf32>
      %231 = vector.shape_cast %230 : vector<1xf32> to vector<1x1x1xf32>
      %232 = vector.extract %231[0, 0, 0] : f32 from vector<1x1x1xf32>
      %cst_75 = arith.constant 9.375000e-02 : f32
      %233 = arith.mulf %232, %cst_75 : f32
      %234 = math.rsqrt %233 : f32
      %235 = vector.broadcast %234 : f32 to vector<1x128xf32>
      %236 = arith.mulf %227, %235 : vector<1x128xf32>
      %cst_76 = arith.constant 0.000000e+00 : f32
      %237 = vector.broadcast %cst_76 : f32 to vector<1x128xf32>
      %238 = arith.mulf %222, %236 : vector<1x128xf32>
      %239 = vector.shape_cast %238 : vector<1x128xf32> to vector<1x1x128xf32>
      %cst_77 = arith.constant dense<0.000000e+00> : vector<1xf32>
      %240 = vector.multi_reduction <add>, %239, %cst_77 [1, 2] : vector<1x1x128xf32> to vector<1xf32>
      %241 = vector.shape_cast %240 : vector<1xf32> to vector<1x1x1xf32>
      %242 = vector.extract %241[0, 0, 0] : f32 from vector<1x1x1xf32>
      %cst_78 = arith.constant 9.375000e-02 : f32
      %243 = arith.mulf %242, %cst_78 : f32
      %244 = vector.broadcast %243 : f32 to vector<1x128xf32>
      %245 = arith.mulf %222, %244 : vector<1x128xf32>
      %246 = arith.addf %237, %245 : vector<1x128xf32>
      %247 = arith.subf %236, %246 : vector<1x128xf32>
      %248 = arith.mulf %247, %247 : vector<1x128xf32>
      %249 = vector.shape_cast %248 : vector<1x128xf32> to vector<1x1x128xf32>
      %cst_79 = arith.constant dense<0.000000e+00> : vector<1xf32>
      %250 = vector.multi_reduction <add>, %249, %cst_79 [1, 2] : vector<1x1x128xf32> to vector<1xf32>
      %251 = vector.shape_cast %250 : vector<1xf32> to vector<1x1x1xf32>
      %252 = vector.extract %251[0, 0, 0] : f32 from vector<1x1x1xf32>
      %cst_80 = arith.constant 9.375000e-02 : f32
      %253 = arith.mulf %252, %cst_80 : f32
      %cst_81 = arith.constant 1.000000e+00 : f32
      %254 = arith.divf %cst_81, %253 : f32
      %255 = vector.broadcast %254 : f32 to vector<1x128xf32>
      %256 = arith.mulf %247, %255 : vector<1x128xf32>
      %cst_82 = arith.constant 4.000000e-01 : f32
      %257 = vector.broadcast %cst_82 : f32 to vector<1x128xf32>
      %258 = arith.mulf %257, %256 : vector<1x128xf32>
      %cst_83 = arith.constant 6.000000e-01 : f32
      %259 = vector.broadcast %cst_83 : f32 to vector<1x128xf32>
      %260 = arith.mulf %259, %223 : vector<1x128xf32>
      %261 = arith.addf %258, %260 : vector<1x128xf32>
      %c0_i32_84 = arith.constant 0 : i32
      %262 = vector.broadcast %c0_i32_84 : i32 to vector<8x128xi32>
      %263 = arith.cmpi eq, %5, %262 : vector<8x128xi32>
      %264 = vector.shape_cast %222 : vector<1x128xf32> to vector<1x128xf32>
      %265 = vector.broadcast %264 : vector<1x128xf32> to vector<8x128xf32>
      %266 = arith.select %263, %265, %arg7 : vector<8x128xi1>, vector<8x128xf32>
      %c1_i32_85 = arith.constant 1 : i32
      %267 = vector.broadcast %c1_i32_85 : i32 to vector<8x128xi32>
      %268 = arith.cmpi eq, %5, %267 : vector<8x128xi32>
      %269 = vector.shape_cast %261 : vector<1x128xf32> to vector<1x128xf32>
      %270 = vector.broadcast %269 : vector<1x128xf32> to vector<8x128xf32>
      %271 = arith.select %268, %270, %266 : vector<8x128xi1>, vector<8x128xf32>
      scf.yield %271 : vector<8x128xf32>
    }
    %9 = arith.mulf %8, %8 : vector<8x128xf32>
    %cst_7 = arith.constant dense<0.000000e+00> : vector<128xf32>
    %10 = vector.multi_reduction <add>, %9, %cst_7 [0] : vector<8x128xf32> to vector<128xf32>
    %11 = vector.shape_cast %10 : vector<128xf32> to vector<1x128xf32>
    %cst_8 = arith.constant dense<0.000000e+00> : vector<128x128xf32>
    %12 = tpu.matmul %8, %8, %cst_8 {dimension_numbers = #tpu.dot_dimension_numbers<[0], [0], [1], [1], [0, 1, 1, 1], [], []>} : vector<8x128xf32>, vector<8x128xf32>, vector<128x128xf32> -> vector<128x128xf32>
    %cst_9 = arith.constant dense<0.000000e+00> : vector<1x128xf32>
    %13 = tpu.matmul %11, %4, %cst_9 {dimension_numbers = #tpu.dot_dimension_numbers<[1], [1], [0], [0], [0, 0, 1, 0], [], []>} : vector<1x128xf32>, vector<128x128xf32>, vector<1x128xf32> -> vector<1x128xf32>
    %cst_10 = arith.constant 0.000000e+00 : f32
    %14 = vector.broadcast %cst_10 : f32 to vector<1x128xf32>
    %15 = arith.subf %14, %13 : vector<1x128xf32>
    %16 = arith.mulf %4, %12 : vector<128x128xf32>
    %17 = arith.addf %15, %1 : vector<1x128xf32>
    %18 = arith.addf %0, %16 : vector<128x128xf32>
    %cst_11 = arith.constant dense<0.000000e+00> : vector<8x128xf32>
    %19 = tpu.matmul %8, %18, %cst_11 {dimension_numbers = #tpu.dot_dimension_numbers<[1], [1], [0], [0], [0, 0, 1, 0], [], []>} : vector<8x128xf32>, vector<128x128xf32>, vector<8x128xf32> -> vector<8x128xf32>
    %20 = vector.broadcast %17 : vector<1x128xf32> to vector<8x128xf32>
    %21 = arith.mulf %8, %20 : vector<8x128xf32>
    %22 = arith.addf %19, %21 : vector<8x128xf32>
    %23 = vector.extract_strided_slice %8 {offsets = [0, 0], sizes = [1, 128], strides = [1, 1]} : vector<8x128xf32> to vector<1x128xf32>
    %24 = vector.extract_strided_slice %22 {offsets = [0, 0], sizes = [1, 128], strides = [1, 1]} : vector<8x128xf32> to vector<1x128xf32>
    %cst_12 = arith.constant 0.00534245791 : f32
    %25 = vector.broadcast %cst_12 : f32 to vector<1x128xf32>
    %26 = arith.mulf %24, %25 : vector<1x128xf32>
    %27 = arith.subf %23, %26 : vector<1x128xf32>
    %28 = arith.mulf %27, %27 : vector<1x128xf32>
    %29 = vector.shape_cast %28 : vector<1x128xf32> to vector<1x1x128xf32>
    %cst_13 = arith.constant dense<0.000000e+00> : vector<1xf32>
    %30 = vector.multi_reduction <add>, %29, %cst_13 [1, 2] : vector<1x1x128xf32> to vector<1xf32>
    %31 = vector.shape_cast %30 : vector<1xf32> to vector<1x1x1xf32>
    %32 = vector.extract %31[0, 0, 0] : f32 from vector<1x1x1xf32>
    %cst_14 = arith.constant 9.375000e-02 : f32
    %33 = arith.mulf %32, %cst_14 : f32
    %34 = math.rsqrt %33 : f32
    %35 = vector.broadcast %34 : f32 to vector<1x128xf32>
    %36 = arith.mulf %27, %35 : vector<1x128xf32>
    %cst_15 = arith.constant 0.000000e+00 : f32
    %37 = vector.broadcast %cst_15 : f32 to vector<1x128xf32>
    %38 = arith.subf %36, %37 : vector<1x128xf32>
    %39 = arith.mulf %38, %38 : vector<1x128xf32>
    %40 = vector.shape_cast %39 : vector<1x128xf32> to vector<1x1x128xf32>
    %cst_16 = arith.constant dense<0.000000e+00> : vector<1xf32>
    %41 = vector.multi_reduction <add>, %40, %cst_16 [1, 2] : vector<1x1x128xf32> to vector<1xf32>
    %42 = vector.shape_cast %41 : vector<1xf32> to vector<1x1x1xf32>
    %43 = vector.extract %42[0, 0, 0] : f32 from vector<1x1x1xf32>
    %cst_17 = arith.constant 9.375000e-02 : f32
    %44 = arith.mulf %43, %cst_17 : f32
    %cst_18 = arith.constant 1.000000e+00 : f32
    %45 = arith.divf %cst_18, %44 : f32
    %46 = vector.broadcast %45 : f32 to vector<1x128xf32>
    %47 = arith.mulf %38, %46 : vector<1x128xf32>
    %cst_19 = arith.constant 4.000000e-01 : f32
    %48 = vector.broadcast %cst_19 : f32 to vector<1x128xf32>
    %49 = arith.mulf %48, %47 : vector<1x128xf32>
    %cst_20 = arith.constant 6.000000e-01 : f32
    %50 = vector.broadcast %cst_20 : f32 to vector<1x128xf32>
    %51 = arith.mulf %50, %23 : vector<1x128xf32>
    %52 = arith.addf %49, %51 : vector<1x128xf32>
    %53 = vector.extract_strided_slice %8 {offsets = [1, 0], sizes = [1, 128], strides = [1, 1]} : vector<8x128xf32> to vector<1x128xf32>
    %54 = vector.extract_strided_slice %22 {offsets = [1, 0], sizes = [1, 128], strides = [1, 1]} : vector<8x128xf32> to vector<1x128xf32>
    %cst_21 = arith.constant 0.00534245791 : f32
    %55 = vector.broadcast %cst_21 : f32 to vector<1x128xf32>
    %56 = arith.mulf %54, %55 : vector<1x128xf32>
    %57 = arith.subf %53, %56 : vector<1x128xf32>
    %58 = arith.mulf %57, %57 : vector<1x128xf32>
    %59 = vector.shape_cast %58 : vector<1x128xf32> to vector<1x1x128xf32>
    %cst_22 = arith.constant dense<0.000000e+00> : vector<1xf32>
    %60 = vector.multi_reduction <add>, %59, %cst_22 [1, 2] : vector<1x1x128xf32> to vector<1xf32>
    %61 = vector.shape_cast %60 : vector<1xf32> to vector<1x1x1xf32>
    %62 = vector.extract %61[0, 0, 0] : f32 from vector<1x1x1xf32>
    %cst_23 = arith.constant 9.375000e-02 : f32
    %63 = arith.mulf %62, %cst_23 : f32
    %64 = math.rsqrt %63 : f32
    %65 = vector.broadcast %64 : f32 to vector<1x128xf32>
    %66 = arith.mulf %57, %65 : vector<1x128xf32>
    %cst_24 = arith.constant 0.000000e+00 : f32
    %67 = vector.broadcast %cst_24 : f32 to vector<1x128xf32>
    %68 = arith.mulf %52, %66 : vector<1x128xf32>
    %69 = vector.shape_cast %68 : vector<1x128xf32> to vector<1x1x128xf32>
    %cst_25 = arith.constant dense<0.000000e+00> : vector<1xf32>
    %70 = vector.multi_reduction <add>, %69, %cst_25 [1, 2] : vector<1x1x128xf32> to vector<1xf32>
    %71 = vector.shape_cast %70 : vector<1xf32> to vector<1x1x1xf32>
    %72 = vector.extract %71[0, 0, 0] : f32 from vector<1x1x1xf32>
    %cst_26 = arith.constant 9.375000e-02 : f32
    %73 = arith.mulf %72, %cst_26 : f32
    %74 = vector.broadcast %73 : f32 to vector<1x128xf32>
    %75 = arith.mulf %52, %74 : vector<1x128xf32>
    %76 = arith.addf %67, %75 : vector<1x128xf32>
    %77 = arith.subf %66, %76 : vector<1x128xf32>
    %78 = arith.mulf %77, %77 : vector<1x128xf32>
    %79 = vector.shape_cast %78 : vector<1x128xf32> to vector<1x1x128xf32>
    %cst_27 = arith.constant dense<0.000000e+00> : vector<1xf32>
    %80 = vector.multi_reduction <add>, %79, %cst_27 [1, 2] : vector<1x1x128xf32> to vector<1xf32>
    %81 = vector.shape_cast %80 : vector<1xf32> to vector<1x1x1xf32>
    %82 = vector.extract %81[0, 0, 0] : f32 from vector<1x1x1xf32>
    %cst_28 = arith.constant 9.375000e-02 : f32
    %83 = arith.mulf %82, %cst_28 : f32
    %cst_29 = arith.constant 1.000000e+00 : f32
    %84 = arith.divf %cst_29, %83 : f32
    %85 = vector.broadcast %84 : f32 to vector<1x128xf32>
    %86 = arith.mulf %77, %85 : vector<1x128xf32>
    %cst_30 = arith.constant 4.000000e-01 : f32
    %87 = vector.broadcast %cst_30 : f32 to vector<1x128xf32>
    %88 = arith.mulf %87, %86 : vector<1x128xf32>
    %cst_31 = arith.constant 6.000000e-01 : f32
    %89 = vector.broadcast %cst_31 : f32 to vector<1x128xf32>
    %90 = arith.mulf %89, %53 : vector<1x128xf32>
    %91 = arith.addf %88, %90 : vector<1x128xf32>
    %c0_i32_32 = arith.constant 0 : i32
    %92 = vector.broadcast %c0_i32_32 : i32 to vector<8x128xi32>
    %93 = arith.cmpi eq, %5, %92 : vector<8x128xi32>
    %94 = vector.shape_cast %52 : vector<1x128xf32> to vector<1x128xf32>
    %95 = vector.broadcast %94 : vector<1x128xf32> to vector<8x128xf32>
    %96 = arith.select %93, %95, %8 : vector<8x128xi1>, vector<8x128xf32>
    %c1_i32_33 = arith.constant 1 : i32
    %97 = vector.broadcast %c1_i32_33 : i32 to vector<8x128xi32>
    %98 = arith.cmpi eq, %5, %97 : vector<8x128xi32>
    %99 = vector.shape_cast %91 : vector<1x128xf32> to vector<1x128xf32>
    %100 = vector.broadcast %99 : vector<1x128xf32> to vector<8x128xf32>
    %101 = arith.select %98, %100, %96 : vector<8x128xi1>, vector<8x128xf32>
    %102 = arith.mulf %8, %22 : vector<8x128xf32>
    %cst_34 = arith.constant dense<0.000000e+00> : vector<8xf32>
    %103 = vector.multi_reduction <add>, %102, %cst_34 [1] : vector<8x128xf32> to vector<8xf32>
    %104 = vector.shape_cast %103 : vector<8xf32> to vector<8x1xf32>
    %cst_35 = arith.constant 9.375000e-02 : f32
    %105 = vector.broadcast %cst_35 : f32 to vector<8x1xf32>
    %106 = arith.mulf %105, %104 : vector<8x1xf32>
    %107 = vector.shape_cast %106 : vector<8x1xf32> to vector<1x8x1xf32>
    %cst_36 = arith.constant dense<0.000000e+00> : vector<1xf32>
    %108 = vector.multi_reduction <add>, %107, %cst_36 [1, 2] : vector<1x8x1xf32> to vector<1xf32>
    %109 = vector.shape_cast %108 : vector<1xf32> to vector<1x1x1xf32>
    %110 = vector.extract %109[0, 0, 0] : f32 from vector<1x1x1xf32>
    %cst_37 = arith.constant dense<0.000000e+00> : vector<8x128xf32>
    %111 = tpu.matmul %101, %0, %cst_37 {dimension_numbers = #tpu.dot_dimension_numbers<[1], [1], [0], [0], [0, 0, 1, 0], [], []>} : vector<8x128xf32>, vector<128x128xf32>, vector<8x128xf32> -> vector<8x128xf32>
    %112 = arith.mulf %101, %111 : vector<8x128xf32>
    %113 = vector.shape_cast %112 : vector<8x128xf32> to vector<1x8x128xf32>
    %cst_38 = arith.constant dense<0.000000e+00> : vector<1xf32>
    %114 = vector.multi_reduction <add>, %113, %cst_38 [1, 2] : vector<1x8x128xf32> to vector<1xf32>
    %115 = vector.shape_cast %114 : vector<1xf32> to vector<1x1x1xf32>
    %116 = vector.extract %115[0, 0, 0] : f32 from vector<1x1x1xf32>
    %cst_39 = arith.constant 9.375000e-02 : f32
    %117 = arith.mulf %cst_39, %116 : f32
    %cst_40 = arith.constant dense<0.000000e+00> : vector<8x128xf32>
    %118 = tpu.matmul %101, %16, %cst_40 {dimension_numbers = #tpu.dot_dimension_numbers<[1], [1], [0], [0], [0, 0, 1, 0], [], []>} : vector<8x128xf32>, vector<128x128xf32>, vector<8x128xf32> -> vector<8x128xf32>
    %119 = vector.broadcast %17 : vector<1x128xf32> to vector<8x128xf32>
    %120 = arith.mulf %101, %119 : vector<8x128xf32>
    %121 = arith.addf %118, %120 : vector<8x128xf32>
    %122 = arith.mulf %101, %121 : vector<8x128xf32>
    %123 = vector.shape_cast %122 : vector<8x128xf32> to vector<1x8x128xf32>
    %cst_41 = arith.constant dense<0.000000e+00> : vector<1xf32>
    %124 = vector.multi_reduction <add>, %123, %cst_41 [1, 2] : vector<1x8x128xf32> to vector<1xf32>
    %125 = vector.shape_cast %124 : vector<1xf32> to vector<1x1x1xf32>
    %126 = vector.extract %125[0, 0, 0] : f32 from vector<1x1x1xf32>
    %cst_42 = arith.constant 9.375000e-02 : f32
    %127 = arith.mulf %cst_42, %126 : f32
    %128 = arith.mulf %11, %1 : vector<1x128xf32>
    %129 = vector.shape_cast %128 : vector<1x128xf32> to vector<1x1x128xf32>
    %cst_43 = arith.constant dense<0.000000e+00> : vector<1xf32>
    %130 = vector.multi_reduction <add>, %129, %cst_43 [1, 2] : vector<1x1x128xf32> to vector<1xf32>
    %131 = vector.shape_cast %130 : vector<1xf32> to vector<1x1x1xf32>
    %132 = vector.extract %131[0, 0, 0] : f32 from vector<1x1x1xf32>
    %cst_44 = arith.constant 9.375000e-02 : f32
    %133 = arith.mulf %132, %cst_44 : f32
    %cst_45 = arith.constant 2.000000e+00 : f32
    %134 = arith.divf %133, %cst_45 : f32
    %135 = arith.addf %110, %117 : f32
    %cst_46 = arith.constant 2.000000e+00 : f32
    %136 = arith.divf %135, %cst_46 : f32
    %137 = arith.addf %136, %134 : f32
    %cst_47 = arith.constant 2.000000e+00 : f32
    %138 = arith.mulf %cst_47, %134 : f32
    %139 = arith.subf %127, %138 : f32
    %cst_48 = arith.constant 2.000000e+00 : f32
    %140 = arith.divf %139, %cst_48 : f32
    %141 = arith.subf %110, %140 : f32
    %142 = tpu.iota {dimensions = array<i32: 1>} : vector<1x128xi32>
    %c0_i32_49 = arith.constant 0 : i32
    %143 = vector.broadcast %c0_i32_49 : i32 to vector<1x128xi32>
    %144 = arith.cmpi eq, %142, %143 : vector<1x128xi32>
    %cst_50 = arith.constant 0.000000e+00 : f32
    %145 = vector.broadcast %141 : f32 to vector<1x128xf32>
    %146 = vector.broadcast %cst_50 : f32 to vector<1x128xf32>
    %147 = arith.select %144, %145, %146 : vector<1x128xi1>, vector<1x128xf32>
    %c1_i32_51 = arith.constant 1 : i32
    %148 = vector.broadcast %c1_i32_51 : i32 to vector<1x128xi32>
    %149 = arith.cmpi eq, %142, %148 : vector<1x128xi32>
    %cst_52 = arith.constant 0.000000e+00 : f32
    %150 = vector.broadcast %137 : f32 to vector<1x128xf32>
    %151 = vector.broadcast %cst_52 : f32 to vector<1x128xf32>
    %152 = arith.select %149, %150, %151 : vector<1x128xi1>, vector<1x128xf32>
    %153 = arith.addf %147, %152 : vector<1x128xf32>
    %c2_i32 = arith.constant 2 : i32
    %154 = vector.broadcast %c2_i32 : i32 to vector<1x128xi32>
    %155 = arith.cmpi eq, %142, %154 : vector<1x128xi32>
    %cst_53 = arith.constant 0.000000e+00 : f32
    %156 = vector.broadcast %117 : f32 to vector<1x128xf32>
    %157 = vector.broadcast %cst_53 : f32 to vector<1x128xf32>
    %158 = arith.select %155, %156, %157 : vector<1x128xi1>, vector<1x128xf32>
    %159 = arith.addf %153, %158 : vector<1x128xf32>
    %c3_i32 = arith.constant 3 : i32
    %160 = vector.broadcast %c3_i32 : i32 to vector<1x128xi32>
    %161 = arith.cmpi eq, %142, %160 : vector<1x128xi32>
    %cst_54 = arith.constant 0.000000e+00 : f32
    %162 = vector.broadcast %134 : f32 to vector<1x128xf32>
    %163 = vector.broadcast %cst_54 : f32 to vector<1x128xf32>
    %164 = arith.select %161, %162, %163 : vector<1x128xi1>, vector<1x128xf32>
    %165 = arith.addf %159, %164 : vector<1x128xf32>
    %c4_i32 = arith.constant 4 : i32
    %166 = vector.broadcast %c4_i32 : i32 to vector<1x128xi32>
    %167 = arith.cmpi eq, %142, %166 : vector<1x128xi32>
    %cst_55 = arith.constant 0.000000e+00 : f32
    %168 = vector.broadcast %139 : f32 to vector<1x128xf32>
    %169 = vector.broadcast %cst_55 : f32 to vector<1x128xf32>
    %170 = arith.select %167, %168, %169 : vector<1x128xi1>, vector<1x128xf32>
    %171 = arith.addf %165, %170 : vector<1x128xf32>
    %c5_i32 = arith.constant 5 : i32
    %172 = vector.broadcast %c5_i32 : i32 to vector<1x128xi32>
    %173 = arith.cmpi eq, %142, %172 : vector<1x128xi32>
    %cst_56 = arith.constant 0.000000e+00 : f32
    %174 = vector.broadcast %110 : f32 to vector<1x128xf32>
    %175 = vector.broadcast %cst_56 : f32 to vector<1x128xf32>
    %176 = arith.select %173, %174, %175 : vector<1x128xi1>, vector<1x128xf32>
    %177 = arith.addf %171, %176 : vector<1x128xf32>
    %c0_57 = arith.constant 0 : index
    %c0_58 = arith.constant 0 : index
    %178 = vector.load %arg5[%c0_57, %c0_58] : memref<1x128xf32, #tpu.memory_space<vmem>>, vector<1x128xf32>
    tpu.vector_store %arg5[%c0_57, %c0_58], %177 {strides = array<i32>} : memref<1x128xf32, #tpu.memory_space<vmem>>, vector<1x128xf32>,
    return
  }
  func.func @transform_0(%arg0: i32) -> (i32, i32) {
    %c0_i32 = arith.constant 0 : i32
    %c0_i32_0 = arith.constant 0 : i32
    %c0_i32_1 = arith.constant 0 : i32
    return %c0_i32, %c0_i32_0 : i32, i32
  }
  func.func @transform_1(%arg0: i32) -> (i32, i32) {
    %c0_i32 = arith.constant 0 : i32
    %c0_i32_0 = arith.constant 0 : i32
    %c0_i32_1 = arith.constant 0 : i32
    return %c0_i32, %c0_i32_0 : i32, i32
  }
  func.func @transform_2(%arg0: i32) -> (i32, i32) {
    %c0_i32 = arith.constant 0 : i32
    %c0_i32_0 = arith.constant 0 : i32
    %c0_i32_1 = arith.constant 0 : i32
    return %c0_i32, %c0_i32_0 : i32, i32
  }
  func.func @transform_3(%arg0: i32) -> (i32, i32) {
    %c0_i32 = arith.constant 0 : i32
    %c0_i32_0 = arith.constant 0 : i32
    %c0_i32_1 = arith.constant 0 : i32
    return %c0_i32, %c0_i32_0 : i32, i32
  }
  func.func @transform_4(%arg0: i32) -> (i32, i32) {
    %c0_i32 = arith.constant 0 : i32
    %c0_i32_0 = arith.constant 0 : i32
    %c0_i32_1 = arith.constant 0 : i32
    return %c0_i32, %c0_i32_0 : i32, i32
  }
}

</mosaic_0001>

<bundles_post_ra>
// kernel: tpu_custom_call.1
= control target key start
LH: loop header
LB: loop body
LE: loop exit
PB: predicated region body
PF: predicated region fallthrough
CT: control target
= control target key end

     0   :  { %9 = vsyncpa [#allocation3], 0  ;;  %s2543_s0 = inlined_call_operand.hbm [shape: f32[128,128], index: 0, kind: input, shape index: {}]   ;;  %s2544_s1 = inlined_call_operand.hbm [shape: f32[128,128], index: 1, kind: input, shape index: {}]   ;;  %s2545_s2 = inlined_call_operand.vmem [shape: f32[1,128], index: 2, kind: input, shape index: {}]   ;;  %s2546_s3 = inlined_call_operand.hbm [shape: f32[8,128], index: 3, kind: input, shape index: {}]   ;;  %s2547_s4 = inlined_call_operand.hbm [shape: f32[1,128], index: 4, kind: output, shape index: {}]  }
   0x1   :  { %10 = vsyncpa [#allocation6], 0 }
   0x2   :  { %11 = vsyncpa [#allocation4], 0  ;;  %s2042_s15 = smov [#allocation5]   ;;  %s2043_s17 = smov [#allocation2]  }
   0x3   :  { %s29_s16 = sshll.u32 %s2042_s15, 4  ;;  %s17_s18 = sshll.u32 %s2043_s17, 4  ;;  %s30_s16 = int_to_ptr.vmem [resolvable:$true] %s29_s16  ;;  %s18_s18 = int_to_ptr.vmem [resolvable:$true] %s17_s18 }
   0x4   :  { %s1948_s19 = scalar_lea.vmem %s30_s16, 2048  ;;  %p1953_p1 = scmp.lt.s32.totalorder %s30_s16, %s30_s16 }
   0x5   :  { %p1949_p0 = scmp.ne.s32.totalorder %s30_s16, %s1948_s19  ;;  %p1954_p2 = scmp.lt.s32.totalorder %s1948_s19, %s1948_s19 }
   0x7   :  { %p1955_p3 = por %p1954_p2, %p1953_p1 }
   0x9   :  { %p1956_p4 = pnand %p1955_p3, %p1949_p0 }
   0xb   :  { %1959 = shalt.err (!%p1956_p4)
}
   0xc   :  { %s2044_s20 = smov 128   ;;  %s2045_s21 = smov 8  }
   0xd   :  { %35 = dma.hbm_to_vmem [thread:$0]  %s2544_s1, 2048, %s30_s16, [#allocation6], %s2044_s20, %s2044_s20, %s2045_s21  }
   0xe   :  { %s1968_s24 = scalar_lea.vmem %s18_s18, 2048  ;;  %p1973_p6 = scmp.lt.s32.totalorder %s18_s18, %s18_s18 }
   0xf   :  { %p1969_p5 = scmp.ne.s32.totalorder %s18_s18, %s1968_s24  ;;  %p1974_p7 = scmp.lt.s32.totalorder %s1968_s24, %s1968_s24 }
  0x11   :  { %p1975_p8 = por %p1974_p7, %p1973_p6 }
  0x13   :  { %p1976_p9 = pnand %p1975_p8, %p1969_p5 }
  0x15   :  { %1979 = shalt.err (!%p1976_p9)
}
  0x16   :  { %23 = dma.hbm_to_vmem [thread:$0]  %s2543_s0, 2048, %s18_s18, [#allocation3], %s2044_s20, %s2044_s20, %s2045_s21  }
  0x17   :  { %s2046_s27 = smov [#allocation7]  }
  0x18   :  { %s44_s28 = sshll.u32 %s2046_s27, 4  ;;  %s45_s28 = int_to_ptr.vmem [resolvable:$true] %s44_s28 }
  0x19   :  { %s1988_s29 = scalar_lea.vmem %s45_s28, 128  ;;  %p1993_p11 = scmp.lt.s32.totalorder %s45_s28, %s45_s28 }
  0x1a   :  { %p1989_p10 = scmp.ne.s32.totalorder %s45_s28, %s1988_s29  ;;  %p1994_p12 = scmp.lt.s32.totalorder %s1988_s29, %s1988_s29 }
  0x1c   :  { %p1995_p13 = por %p1994_p12, %p1993_p11 }
  0x1e   :  { %p1996_p0 = pnand %p1995_p13, %p1989_p10 }
  0x20   :  { %1999 = shalt.err (!%p1996_p0)
}
  0x21   :  { %47 = dma.hbm_to_vmem [thread:$0]  %s2546_s3, 128, %s45_s28, [#allocation6]  }
  0x22   :  { %2028 = dma.done.wait [#allocation3], 2048  }
  0x23   :  { %2029 = vsyncadd [#allocation3], 4294965248 }
  0x24   :  { %2030 = dma.done.wait [#allocation6], 2176  }
  0x25   :  { %2031 = vsyncadd [#allocation6], 4294965120  ;;  %v106_v0 = vlaneseq  ;;  %v2089_v2 = vld [vmem:[#allocation2] sm:$0xff]  ;;  %v2091_v3 = vld [vmem:[#allocation2 + $0x8] sm:$0xff] }
  0x26   :  { %v2093_v4 = vld [vmem:[#allocation2 + $0x10] sm:$0xff]  ;;  %v2095_v5 = vld [vmem:[#allocation2 + $0x18] sm:$0xff]  ;;  %v2097_v6 = vld [vmem:[#allocation2 + $0x20] sm:$0xff] }
  0x27   :  { %v2087_v1 = vshrl.u32 %v106_v0, 7  ;;  %v2099_v7 = vld [vmem:[#allocation2 + $0x28] sm:$0xff]  ;;  %v2101_v8 = vld [vmem:[#allocation2 + $0x30] sm:$0xff]  ;;  %v2103_v9 = vld [vmem:[#allocation2 + $0x38] sm:$0xff] }
  0x28   :  { %v2105_v10 = vld [vmem:[#allocation2 + $0x40] sm:$0xff]  ;;  %v2107_v11 = vld [vmem:[#allocation2 + $0x48] sm:$0xff]  ;;  %v2109_v12 = vld [vmem:[#allocation2 + $0x50] sm:$0xff] }
  0x29   :  { %v2111_v13 = vld [vmem:[#allocation2 + $0x58] sm:$0xff]  ;;  %v2113_v14 = vld [vmem:[#allocation2 + $0x60] sm:$0xff]  ;;  %v2115_v15 = vld [vmem:[#allocation2 + $0x68] sm:$0xff] }
  0x2a   :  { %v2117_v16 = vld [vmem:[#allocation2 + $0x70] sm:$0xff]  ;;  %v2119_v17 = vld [vmem:[#allocation2 + $0x78] sm:$0xff]  ;;  %v2124_v18 = vld [vmem:[%s2545_s2] sm:$0x1]  ;;  %s2160_s2 = smov 0  }
  0x2b   :  { %v74_v19 = vld [vmem:[#allocation5] sm:$0xff]  ;;  %v75_v20 = vld [vmem:[#allocation5 + $0x8] sm:$0xff]  ;;  %v76_v21 = vld [vmem:[#allocation5 + $0x10] sm:$0xff] }
  0x2c   :  { %v77_v22 = vld [vmem:[#allocation5 + $0x18] sm:$0xff]  ;;  %v2126_v23 = vmul.f32 -0.09375, %v74_v19  ;;  %v78_v24 = vld [vmem:[#allocation5 + $0x20] sm:$0xff]  ;;  %v79_v25 = vld [vmem:[#allocation5 + $0x28] sm:$0xff]  ;;  %v2128_v27 = vmul.f32 -0.09375, %v75_v20  ;;  %v2130_v28 = vmul.f32 -0.09375, %v76_v21 }
  0x2d   :  { %v80_v26 = vld [vmem:[#allocation5 + $0x30] sm:$0xff]  ;;  %v2132_v29 = vmul.f32 -0.09375, %v77_v22  ;;  %v81_v30 = vld [vmem:[#allocation5 + $0x38] sm:$0xff]  ;;  %v82_v31 = vld [vmem:[#allocation5 + $0x40] sm:$0xff]  ;;  %v2134_v33 = vmul.f32 -0.09375, %v78_v24  ;;  %v2136_v34 = vmul.f32 -0.09375, %v79_v25 }
  0x2e   :  { %v83_v32 = vld [vmem:[#allocation5 + $0x48] sm:$0xff]  ;;  %v2138_v35 = vmul.f32 -0.09375, %v80_v26  ;;  %v84_v36 = vld [vmem:[#allocation5 + $0x50] sm:$0xff]  ;;  %v85_v37 = vld [vmem:[#allocation5 + $0x58] sm:$0xff]  ;;  %v2140_v39 = vmul.f32 -0.09375, %v81_v30  ;;  %v2142_v40 = vmul.f32 -0.09375, %v82_v31 }
  0x2f   :  { %v86_v38 = vld [vmem:[#allocation5 + $0x60] sm:$0xff]  ;;  %v2144_v41 = vmul.f32 -0.09375, %v83_v32  ;;  %v87_v42 = vld [vmem:[#allocation5 + $0x68] sm:$0xff]  ;;  %v88_v43 = vld [vmem:[#allocation5 + $0x70] sm:$0xff]  ;;  %v2146_v45 = vmul.f32 -0.09375, %v84_v36  ;;  %v2148_v46 = vmul.f32 -0.09375, %v85_v37 }
  0x30   :  { %v89_v44 = vld [vmem:[#allocation5 + $0x78] sm:$0xff]  ;;  %v2150_v47 = vmul.f32 -0.09375, %v86_v38  ;;  %v2152_v48 = vmul.f32 -0.09375, %v87_v42  ;;  %v2154_v49 = vmul.f32 -0.09375, %v88_v43  ;;  %v108_v51 = vld [vmem:[#allocation7] sm:$0xff]  }
  0x31   :  { %v2156_v50 = vmul.f32 -0.09375, %v89_v44 }
  0x32 LB: > { %123 = vxpose.xlu0.b32.start.end [1/1] (short) %v2036_v51, 128  ;;  %1592 = vmatprep.subr.mxu0 %v2036_v51  ;;  %vm155_vm0 = vcmask 64512   ;;  %v2047_v24 = vmov 0.0   ;;  %v116_v25 = vmul.f32 %v2036_v51, %v2036_v51  ;;  %vm2048_vm1 = vmmov 0   ;;  %s114_s2 = sadd.s32 1, %s2040_s2   ;;  %s2040_s2 = sphi %s2160_s2, %s114_s2   ;;  %v2036_v51 = vphi %v108_v51, %v2549_v51  }
  0x33   : > { %1593 = vmatpush3.msra.mxu0 %v2036_v51  ;;  %1618 = vmatprep.subr.mxu1 %v2047_v24  ;;  %vm531_vm2 = vcmask 1040384   ;;  %vm631_vm3 = vcmp.eq.s32.totalorder %v2087_v1, 0  ;;  %vm637_vm4 = vcmp.eq.s32.totalorder %v2087_v1, 1  ;;  %p111_p1 = scmp.ge.s32.totalorder %s114_s2, 49  }
  0x34   : > { %1653 = vmatprep.subr.mxu0 %v2047_v24  ;;  %1619 = vmatpush3.xpose.msra.mxu1 %v2156_v50  ;;  %v117_v26 = vrot.slane %v116_v25, 4  ;;  %vm2050_vm5 = vmmov (%p111_p1), 0   ;;  %vm1174_vm6 = vcmask (%p111_p1), 7168  }
  0x35   : > { %1620 = vmatprep.subr.mxu1 %v2047_v24  ;;  %1650 = vmatprep.mubr.msk.f32.mxu1 %vm2048_vm1, %v2047_v24 }
  0x36   : > { %v118_v30 = vadd.f32 %v117_v26, %v116_v25 }
  0x38   : > { %1621 = vmatpush3.xpose.msra.mxu1 %v2154_v49  ;;  %v119_v31 = vrot.slane %v118_v30, 2 }
  0x39   : > { %1622 = vmatprep.subr.mxu1 %v2047_v24 }
  0x3a   : > { %v120_v32 = vadd.f32 %v119_v31, %v118_v30 }
  0x3c   : > { %1623 = vmatpush3.xpose.msra.mxu1 %v2152_v48  ;;  %v121_v36 = vrot.slane %v120_v32, 1 }
  0x3d   : > { %1624 = vmatprep.subr.mxu1 %v2047_v24 }
  0x3e   : > { %v122_v37 = vadd.f32 %v121_v36, %v120_v32 }
  0x40   : > { %1625 = vmatpush3.xpose.msra.mxu1 %v2150_v47 }
  0x41   : > { %1626 = vmatprep.subr.mxu1 %v2047_v24 }
  0x44   : > { %1627 = vmatpush3.xpose.msra.mxu1 %v2148_v46 }
  0x45   : > { %1628 = vmatprep.subr.mxu1 %v2047_v24 }
  0x48   : > { %1629 = vmatpush3.xpose.msra.mxu1 %v2146_v45 }
  0x49   : > { %1630 = vmatprep.subr.mxu1 %v2047_v24 }
  0x4c   : > { %1631 = vmatpush3.xpose.msra.mxu1 %v2144_v41 }
  0x4d   : > { %1632 = vmatprep.subr.mxu1 %v2047_v24 }
  0x50   : > { %1633 = vmatpush3.xpose.msra.mxu1 %v2142_v40 }
  0x51   : > { %1634 = vmatprep.subr.mxu1 %v2047_v24 }
  0x54   : > { %1635 = vmatpush3.xpose.msra.mxu1 %v2140_v39 }
  0x55   : > { %1636 = vmatprep.subr.mxu1 %v2047_v24 }
  0x58   : > { %1637 = vmatpush3.xpose.msra.mxu1 %v2138_v35 }
  0x59   : > { %1638 = vmatprep.subr.mxu1 %v2047_v24 }
  0x5c   : > { %1639 = vmatpush3.xpose.msra.mxu1 %v2136_v34 }
  0x5d   : > { %1640 = vmatprep.subr.mxu1 %v2047_v24 }
  0x60   : > { %1641 = vmatpush3.xpose.msra.mxu1 %v2134_v33 }
  0x61   : > { %1642 = vmatprep.subr.mxu1 %v2047_v24 }
  0x64   : > { %1643 = vmatpush3.xpose.msra.mxu1 %v2132_v29 }
  0x65   : > { %1644 = vmatprep.subr.mxu1 %v2047_v24 }
  0x68   : > { %1645 = vmatpush3.xpose.msra.mxu1 %v2130_v28 }
  0x69   : > { %1646 = vmatprep.subr.mxu1 %v2047_v24 }
  0x6c   : > { %1647 = vmatpush3.xpose.msra.mxu1 %v2128_v27 }
  0x6d   : > { %1648 = vmatprep.subr.mxu1 %v2047_v24 }
  0x70   : > { %1649 = vmatpush3.xpose.msra.mxu1 %v2126_v23 }
  0x73   : > { %1651 = vmatmul.mubr.f32.vlgmr.msra.gmra.mxu1 %v122_v37 }
  0xae   : > { %v139_v52 = vpop.trf.xlu0 }
  0xaf   : > { %1594 = vmatprep.mubr.msk.f32.mxu0 %vm155_vm0, %v139_v52 }
  0xb2   : > { %v140_v53 = vpop.trf.xlu0 }
  0xb3   : > { %1595 = vmatmul.mubr.msk.f32.vlgmr.msra.gmra.mxu0 %vm155_vm0, %v140_v53 }
  0xb6   : > { %v141_v54 = vpop.trf.xlu0 }
  0xb7   : > { %1597 = vmatprep.mubr.msk.f32.mxu0 %vm155_vm0, %v141_v54 }
  0xba   : > { %v142_v55 = vpop.trf.xlu0 }
  0xbb   : > { %1598 = vmatmul.mubr.msk.f32.gmra.mxu0 %vm155_vm0, %v142_v55 }
  0xbe   : > { %v143_v56 = vpop.trf.xlu0 }
  0xbf   : > { %1600 = vmatprep.mubr.msk.f32.mxu0 %vm155_vm0, %v143_v56 }
  0xc2   : > { %v144_v57 = vpop.trf.xlu0 }
  0xc3   : > { %1601 = vmatmul.mubr.msk.f32.gmra.mxu0 %vm155_vm0, %v144_v57 }
  0xc6   : > { %v145_v58 = vpop.trf.xlu0 }
  0xc7   : > { %1603 = vmatprep.mubr.msk.f32.mxu0 %vm155_vm0, %v145_v58 }
  0xca   : > { %v146_v59 = vpop.trf.xlu0 }
  0xcb   : > { %1604 = vmatmul.mubr.msk.f32.gmra.mxu0 %vm155_vm0, %v146_v59 }
  0xce   : > { %v147_v60 = vpop.trf.xlu0 }
  0xcf   : > { %1606 = vmatprep.mubr.msk.f32.mxu0 %vm155_vm0, %v147_v60 }
  0xd2   : > { %v148_v61 = vpop.trf.xlu0 }
  0xd3   : > { %1607 = vmatmul.mubr.msk.f32.gmra.mxu0 %vm155_vm0, %v148_v61 }
  0xd6   : > { %v149_v62 = vpop.trf.xlu0 }
  0xd7   : > { %1609 = vmatprep.mubr.msk.f32.mxu0 %vm155_vm0, %v149_v62 }
  0xda   : > { %v150_v63 = vpop.trf.xlu0 }
  0xdb   : > { %1610 = vmatmul.mubr.msk.f32.gmra.mxu0 %vm155_vm0, %v150_v63 }
  0xde   : > { %v151_v19 = vpop.trf.xlu0 }
  0xdf   : > { %1612 = vmatprep.mubr.msk.f32.mxu0 %vm155_vm0, %v151_v19 }
  0xe2   : > { %v152_v20 = vpop.trf.xlu0 }
  0xe3   : > { %1613 = vmatmul.mubr.msk.f32.gmra.mxu0 %vm155_vm0, %v152_v20 }
  0xe6   : > { %v153_v21 = vpop.trf.xlu0 }
  0xe7   : > { %1615 = vmatprep.mubr.msk.f32.mxu0 %vm155_vm0, %v153_v21 }
  0xea   : > { %v154_v22 = vpop.trf.xlu0 }
  0xeb   : > { %1616 = vmatmul.mubr.msk.f32.gmra.mxu0 %vm155_vm0, %v154_v22 }
  0xec   : > { %1685 = vmatprep.mubr.msk.f32.mxu0 %vm2048_vm1, %v2047_v24 }
 0x173   : > { %v2224_v38 = vpop.f32.mrf.mxu0 }
 0x175   : > { %v2226_v42 = vpop.f32.mrf.mxu0 }
 0x17b   : > { %v1599_v43 = vpop.f32.mrf.mxu0 }
 0x17d   : > { %v2228_v44 = vpop.f32.mrf.mxu0 }
 0x183   : > { %v1602_v52 = vpop.f32.mrf.mxu0 }
 0x185   : > { %v290_v53 = vpop.f32.mrf.mxu0 }
 0x18b   : > { %v1605_v54 = vpop.f32.mrf.mxu0 }
 0x18d   : > { %v300_v55 = vpop.f32.mrf.mxu0 }
 0x193   : > { %v1608_v56 = vpop.f32.mrf.mxu0 }
 0x195   : > { %v310_v57 = vpop.f32.mrf.mxu0 }
 0x19b   : > { %v1611_v58 = vpop.f32.mrf.mxu0 }
 0x19c   : > { %v431_v31 = vmul.f32 %v1611_v58, %v2148_v46 }
 0x19d   : > { %v320_v59 = vpop.f32.mrf.mxu0 }
 0x19e   : > { %v448_v36 = vadd.f32 %v431_v31, %v2111_v13  ;;  %v430_v37 = vmul.f32 %v320_v59, %v2146_v45  ;;  %v415_v31 = vpop.f32.mrf.mxu1 }
 0x1a3   : > { %v1614_v60 = vpop.f32.mrf.mxu0 }
 0x1a4   : > { %v433_v22 = vmul.f32 %v1614_v60, %v2152_v48  ;;  %v429_v60 = vmul.f32 %v1608_v56, %v2144_v41 }
 0x1a5   : > { %v330_v61 = vpop.f32.mrf.mxu0 }
 0x1a6   : > { %v450_v26 = vadd.f32 %v433_v22, %v2115_v15  ;;  %v432_v30 = vmul.f32 %v330_v61, %v2150_v47  ;;  %v447_v61 = vadd.f32 %v430_v37, %v2109_v12  ;;  %v446_v58 = vadd.f32 %v429_v60, %v2107_v11 }
 0x1a7   : > { %v423_v22 = vmul.f32 %v1599_v43, %v2132_v29  ;;  %v2283_v37 = vsub.s32 0, %v2087_v1 }
 0x1a8   : > { %v449_v32 = vadd.f32 %v432_v30, %v2113_v14  ;;  %v420_v30 = vmul.f32 %v2226_v42, %v2126_v23 }
 0x1ab   : > { %v1617_v62 = vpop.f32.mrf.mxu0 }
 0x1ac   : > { %v435_v63 = vmul.f32 %v1617_v62, %v2156_v50  ;;  %v428_v62 = vmul.f32 %v310_v57, %v2142_v40 }
 0x1ad   : > { %v340_v19 = vpop.f32.mrf.mxu0 }
 0x1ae   : > { %v452_v20 = vadd.f32 %v435_v63, %v2119_v17  ;;  %v434_v21 = vmul.f32 %v340_v19, %v2154_v49  ;;  %v427_v63 = vmul.f32 %v1605_v54, %v2140_v39  ;;  %v445_v59 = vadd.f32 %v428_v62, %v2105_v10 }
 0x1af   : > { %v426_v19 = vmul.f32 %v300_v55, %v2138_v35 }
 0x1b0   : > { %1654 = vmatpush3.xpose.msra.mxu0 %v452_v20  ;;  %v451_v25 = vadd.f32 %v434_v21, %v2117_v16  ;;  %v444_v56 = vadd.f32 %v427_v63, %v2103_v9  ;;  %v425_v20 = vmul.f32 %v1602_v52, %v2136_v34  ;;  %v424_v21 = vmul.f32 %v290_v53, %v2134_v33 }
 0x1b1   : > { %1655 = vmatprep.subr.mxu0 %v2047_v24  ;;  %v443_v57 = vadd.f32 %v426_v19, %v2101_v8  ;;  %v440_v52 = vadd.f32 %v423_v22, %v2095_v5  ;;  %v421_v53 = vmul.f32 %v2224_v38, %v2128_v27  ;;  %v1652_v38 = vpop.f32.mrf.mxu1 }
 0x1b2   : > { %v442_v54 = vadd.f32 %v425_v20, %v2099_v7  ;;  %v441_v55 = vadd.f32 %v424_v21, %v2097_v6 }
 0x1b3   : > { %v438_v43 = vadd.f32 %v421_v53, %v2091_v3 }
 0x1b4   : > { %1656 = vmatpush3.xpose.msra.mxu0 %v451_v25  ;;  %v422_v25 = vmul.f32 %v2228_v44, %v2130_v28  ;;  %v437_v44 = vadd.f32 %v420_v30, %v2089_v2 }
 0x1b5   : > { %1657 = vmatprep.subr.mxu0 %v2047_v24 }
 0x1b8   : > { %1658 = vmatpush3.xpose.msra.mxu0 %v450_v26  ;;  %v439_v26 = vadd.f32 %v422_v25, %v2093_v4 }
 0x1b9   : > { %1659 = vmatprep.subr.mxu0 %v2047_v24 }
 0x1bc   : > { %1660 = vmatpush3.xpose.msra.mxu0 %v449_v32  ;;  %v419_v32 = vsub.f32 0.0, %v415_v31 }
 0x1bd   : > { %1661 = vmatprep.subr.mxu0 %v2047_v24 }
 0x1c0   : > { %1662 = vmatpush3.xpose.msra.mxu0 %v448_v36  ;;  %v436_v36 = vadd.f32 %v419_v32, %v2124_v18 }
 0x1c1   : > { %1663 = vmatprep.subr.mxu0 %v2047_v24 }
 0x1c2   : > { %v456_v60 = vrot.slane %v436_v36, %v2283_v37 }
 0x1c4   : > { %1664 = vmatpush3.xpose.msra.mxu0 %v447_v61  ;;  %v457_v42 = vmul.f32 %v2036_v51, %v456_v60 }
 0x1c5   : > { %1665 = vmatprep.subr.mxu0 %v2047_v24 }
 0x1c8   : > { %1666 = vmatpush3.xpose.msra.mxu0 %v446_v58 }
 0x1c9   : > { %1667 = vmatprep.subr.mxu0 %v2047_v24 }
 0x1cc   : > { %1668 = vmatpush3.xpose.msra.mxu0 %v445_v59 }
 0x1cd   : > { %1669 = vmatprep.subr.mxu0 %v2047_v24 }
 0x1d0   : > { %1670 = vmatpush3.xpose.msra.mxu0 %v444_v56 }
 0x1d1   : > { %1671 = vmatprep.subr.mxu0 %v2047_v24 }
 0x1d4   : > { %1672 = vmatpush3.xpose.msra.mxu0 %v443_v57 }
 0x1d5   : > { %1673 = vmatprep.subr.mxu0 %v2047_v24 }
 0x1d8   : > { %1674 = vmatpush3.xpose.msra.mxu0 %v442_v54 }
 0x1d9   : > { %1675 = vmatprep.subr.mxu0 %v2047_v24 }
 0x1dc   : > { %1676 = vmatpush3.xpose.msra.mxu0 %v441_v55 }
 0x1dd   : > { %1677 = vmatprep.subr.mxu0 %v2047_v24 }
 0x1e0   : > { %1678 = vmatpush3.xpose.msra.mxu0 %v440_v52 }
 0x1e1   : > { %1679 = vmatprep.subr.mxu0 %v2047_v24 }
 0x1e4   : > { %1680 = vmatpush3.xpose.msra.mxu0 %v439_v26 }
 0x1e5   : > { %1681 = vmatprep.subr.mxu0 %v2047_v24 }
 0x1e8   : > { %1682 = vmatpush3.xpose.msra.mxu0 %v438_v43 }
 0x1e9   : > { %1683 = vmatprep.subr.mxu0 %v2047_v24 }
 0x1ec   : > { %1684 = vmatpush3.xpose.msra.mxu0 %v437_v44 }
 0x1ef   : > { %1686 = vmatmul.mubr.f32.vlgmr.msra.gmra.mxu0 %v2036_v51 }
 0x2af   : > { %v524_v61 = vpop.f32.mrf.mxu0 }
 0x2b0   : > { %v525_v58 = vadd.f32 %v524_v61, %v457_v42 }
 0x2b1   : > { %v1687_v24 = vpop.f32.mrf.mxu0 }
 0x2b2   : > { %v528_v62 = vmul.f32 0.005342458, %v525_v58 }
 0x2b4   : > { %v2288_v63 = vsub.f32 %v2036_v51, %v528_v62 }
 0x2b6   : > { %v530_v59 = vmul.f32 %v2288_v63, %v2288_v63 }
 0x2b8   : > { %v532_v56 = vsel %vm531_vm2, %v530_v59, 0.0  ;;  %v569_v44 = vrot.slane %v530_v59, 1 }
 0x2b9   : > { %533 = vadd.xlane.f32.xlu0 %v532_v56 }
 0x2ba   : > { %v571_v31 = vsel %vm531_vm2, %v569_v44, 0.0 }
 0x342   : > { %v534_v19 = vpop.xlane.xlu0 %533 }
 0x343   : > { %v535_v20 = vrot.slane %v534_v19, 4 }
 0x345   : > { %v536_v57 = vadd.f32 %v535_v20, %v534_v19 }
 0x347   : > { %v537_v54 = vrot.slane %v536_v57, 2 }
 0x349   : > { %v538_v21 = vadd.f32 %v537_v54, %v536_v57 }
 0x34b   : > { %v539_v22 = vrot.slane %v538_v21, 1 }
 0x34d   : > { %v540_v55 = vadd.f32 %v539_v22, %v538_v21 }
 0x34f   : > { %1854 = vpush %v540_v55 }
 0x380   : > { %s1855_s5 = spop %1854 }
 0x381   : > { %s542_s6 = smul.f32 0.09375, %s1855_s5 }
 0x383   : > { %v543_v52 = vstv %s542_s6 }
 0x384   : > { %1924 = vrsqrt.f32 %v543_v52 }
 0x391   : > { %v1925_v25 = vpop.eup %1924 }
 0x392   : > { %1856 = vpush %v1925_v25 }
 0x3c3   : > { %s1857_s7 = spop %1856 }
 0x3c4   : > { %v546_v53 = vstv %s1857_s7 }
 0x3c5   : > { %v547_v26 = vmul.f32 %v546_v53, %v2288_v63 }
 0x3c7   : > { %v548_v43 = vmul.f32 %v547_v26, %v547_v26 }
 0x3c9   : > { %v549_v30 = vsel %vm531_vm2, %v548_v43, 0.0  ;;  %v566_v43 = vmul.f32 0.6, %v2036_v51 }
 0x3ca   : > { %550 = vadd.xlane.f32.xlu1 %v549_v30 }
 0x3ce   : > { %572 = vadd.xlane.f32.xlu1 %v571_v31 }
 0x453   : > { %v551_v38 = vpop.xlane.xlu1 %550 }
 0x454   : > { %v552_v32 = vrot.slane %v551_v38, 4 }
 0x456   : > { %v553_v36 = vadd.f32 %v552_v32, %v551_v38 }
 0x457   : > { %v573_v24 = vpop.xlane.xlu1 %572 }
 0x458   : > { %v554_v60 = vrot.slane %v553_v36, 2  ;;  %v574_v62 = vrot.slane %v573_v24, 4 }
 0x45a   : > { %v555_v42 = vadd.f32 %v554_v60, %v553_v36  ;;  %v575_v56 = vadd.f32 %v574_v62, %v573_v24 }
 0x45c   : > { %v556_v61 = vrot.slane %v555_v42, 1  ;;  %v576_v59 = vrot.slane %v575_v56, 2 }
 0x45e   : > { %v557_v58 = vadd.f32 %v556_v61, %v555_v42  ;;  %v577_v20 = vadd.f32 %v576_v59, %v575_v56 }
 0x460   : > { %1858 = vpush %v557_v58  ;;  %v578_v57 = vrot.slane %v577_v20, 1 }
 0x462   : > { %v579_v21 = vadd.f32 %v578_v57, %v577_v20 }
 0x491   : > { %s1859_s8 = spop %1858 }
 0x492   : > { %s559_s9 = smul.f32 0.09375, %s1859_s8 }
 0x494   : > { %v560_v19 = vstv %s559_s9 }
 0x495   : > { %1926 = vrcp.f32 %v560_v19 }
 0x4a2   : > { %v1927_v54 = vpop.eup %1926 }
 0x4a3   : > { %1860 = vpush %v1927_v54 }
 0x4a4   : > { %1862 = vpush %v579_v21 }
 0x4d4   : > { %s1861_s10 = spop %1860 }
 0x4d5   : > { %s1863_s11 = spop %1862  ;;  %v563_v52 = vstv %s1861_s10 }
 0x4d6   : > { %s581_s12 = smul.f32 0.09375, %s1863_s11  ;;  %v564_v25 = vmul.f32 %v563_v52, %v547_v26 }
 0x4d8   : > { %v582_v22 = vstv %s581_s12  ;;  %v565_v53 = vmul.f32 0.4, %v564_v25 }
 0x4d9   : > { %1928 = vrsqrt.f32 %v582_v22 }
 0x4da   : > { %v567_v31 = vadd.f32 %v566_v43, %v565_v53 }
 0x4e6   : > { %v1929_v55 = vpop.eup %1928 }
 0x4e7   : > { %1864 = vpush %v1929_v55 }
 0x518   : > { %s1865_s13 = spop %1864 }
 0x519   : > { %v585_v30 = vstv %s1865_s13 }
 0x51a   : > { %v586_v44 = vmul.f32 %v585_v30, %v2288_v63 }
 0x51c   : > { %v588_v38 = vrot.slane %v586_v44, 1 }
 0x51e   : > { %v590_v32 = vmul.f32 %v588_v38, %v567_v31 }
 0x520   : > { %v591_v36 = vsel %vm531_vm2, %v590_v32, 0.0 }
 0x521   : > { %592 = vadd.xlane.f32.xlu1 %v591_v36 }
 0x5aa   : > { %v593_v60 = vpop.xlane.xlu1 %592 }
 0x5ab   : > { %v594_v42 = vrot.slane %v593_v60, 4 }
 0x5ad   : > { %v595_v61 = vadd.f32 %v594_v42, %v593_v60  ;;  %v640_v42 = vsub.s32 1, %v2087_v1 }
 0x5af   : > { %v596_v58 = vrot.slane %v595_v61, 2 }
 0x5b1   : > { %v597_v24 = vadd.f32 %v596_v58, %v595_v61  ;;  %v635_v61 = vrot.slane %v567_v31, %v2283_v37 }
 0x5b3   : > { %v598_v62 = vrot.slane %v597_v24, 1 }
 0x5b5   : > { %v599_v26 = vadd.f32 %v598_v62, %v597_v24  ;;  %v636_v62 = vsel %vm631_vm3, %v635_v61, %v2036_v51 }
 0x5b7   : > { %1866 = vpush %v599_v26 }
 0x5e8   : > { %s1867_s14 = spop %1866 }
 0x5e9   : > { %s601_s15 = smul.f32 0.09375, %s1867_s14 }
 0x5eb   : > { %v602_v56 = vstv %s601_s15 }
 0x5ec   : > { %v603_v19 = vmul.f32 %v602_v56, %v567_v31 }
 0x5ee   : > { %v606_v59 = vrot.slane %v603_v19, 7 }
 0x5f0   : > { %v608_v63 = vsub.f32 %v586_v44, %v606_v59 }
 0x5f2   : > { %v609_v20 = vmul.f32 %v608_v63, %v608_v63 }
 0x5f4   : > { %v611_v57 = vrot.slane %v609_v20, 1 }
 0x5f6   : > { %v613_v54 = vsel %vm531_vm2, %v611_v57, 0.0 }
 0x5f7   : > { %614 = vadd.xlane.f32.xlu1 %v613_v54 }
 0x680   : > { %v615_v21 = vpop.xlane.xlu1 %614 }
 0x681   : > { %v616_v22 = vrot.slane %v615_v21, 4 }
 0x683   : > { %v617_v55 = vadd.f32 %v616_v22, %v615_v21 }
 0x685   : > { %v618_v52 = vrot.slane %v617_v55, 2 }
 0x687   : > { %v619_v25 = vadd.f32 %v618_v52, %v617_v55 }
 0x689   : > { %v620_v53 = vrot.slane %v619_v25, 1 }
 0x68b   : > { %v621_v30 = vadd.f32 %v620_v53, %v619_v25 }
 0x68d   : > { %1868 = vpush %v621_v30  ;;  %v2049_v30 = vmov (%p111_p1), 0.0  }
 0x68e   :  { %1714 = vmatprep.subr.mxu1 (%p111_p1), %v2049_v30  ;;  %1746 = vmatprep.mubr.msk.f32.mxu1 (%p111_p1), %vm2050_vm5, %v2049_v30 }
 0x68f   :  { %1715 = vmatpush3.xpose.msra.mxu1 (%p111_p1), %v2156_v50 }
 0x690   :  { %1716 = vmatprep.subr.mxu1 (%p111_p1), %v2049_v30 }
 0x693   :  { %1717 = vmatpush3.xpose.msra.mxu1 (%p111_p1), %v2154_v49 }
 0x694   :  { %1718 = vmatprep.subr.mxu1 (%p111_p1), %v2049_v30 }
 0x697   :  { %1719 = vmatpush3.xpose.msra.mxu1 (%p111_p1), %v2152_v48 }
 0x698   :  { %1720 = vmatprep.subr.mxu1 (%p111_p1), %v2049_v30 }
 0x69b   :  { %1721 = vmatpush3.xpose.msra.mxu1 (%p111_p1), %v2150_v47 }
 0x69c   :  { %1722 = vmatprep.subr.mxu1 (%p111_p1), %v2049_v30 }
 0x69f   :  { %1723 = vmatpush3.xpose.msra.mxu1 (%p111_p1), %v2148_v46 }
 0x6a0   :  { %1724 = vmatprep.subr.mxu1 (%p111_p1), %v2049_v30 }
 0x6a3   :  { %1725 = vmatpush3.xpose.msra.mxu1 (%p111_p1), %v2146_v45 }
 0x6a4   :  { %1726 = vmatprep.subr.mxu1 (%p111_p1), %v2049_v30 }
 0x6a7   :  { %1727 = vmatpush3.xpose.msra.mxu1 (%p111_p1), %v2144_v41 }
 0x6a8   :  { %1728 = vmatprep.subr.mxu1 (%p111_p1), %v2049_v30 }
 0x6ab   :  { %1729 = vmatpush3.xpose.msra.mxu1 (%p111_p1), %v2142_v40 }
 0x6ac   :  { %1730 = vmatprep.subr.mxu1 (%p111_p1), %v2049_v30 }
 0x6af   :  { %1731 = vmatpush3.xpose.msra.mxu1 (%p111_p1), %v2140_v39 }
 0x6b0   :  { %1732 = vmatprep.subr.mxu1 (%p111_p1), %v2049_v30 }
 0x6b3   :  { %1733 = vmatpush3.xpose.msra.mxu1 (%p111_p1), %v2138_v35 }
 0x6b4   :  { %1734 = vmatprep.subr.mxu1 (%p111_p1), %v2049_v30 }
 0x6b7   :  { %1735 = vmatpush3.xpose.msra.mxu1 (%p111_p1), %v2136_v34 }
 0x6b8   :  { %1736 = vmatprep.subr.mxu1 (%p111_p1), %v2049_v30 }
 0x6bb   :  { %1737 = vmatpush3.xpose.msra.mxu1 (%p111_p1), %v2134_v33 }
 0x6bc   :  { %1738 = vmatprep.subr.mxu1 (%p111_p1), %v2049_v30 }
 0x6be   : > { %s1869_s16 = spop %1868 }
 0x6bf   : > { %s623_s17 = smul.f32 0.09375, %s1869_s16  ;;  %1739 = vmatpush3.xpose.msra.mxu1 (%p111_p1), %v2132_v29 }
 0x6c0   :  { %1740 = vmatprep.subr.mxu1 (%p111_p1), %v2049_v30 }
 0x6c1   : > { %v624_v38 = vstv %s623_s17 }
 0x6c2   : > { %1930 = vrcp.f32 %v624_v38 }
 0x6c3   :  { %1741 = vmatpush3.xpose.msra.mxu1 (%p111_p1), %v2130_v28 }
 0x6c4   :  { %1742 = vmatprep.subr.mxu1 (%p111_p1), %v2049_v30 }
 0x6c7   :  { %1743 = vmatpush3.xpose.msra.mxu1 (%p111_p1), %v2128_v27 }
 0x6c8   :  { %1744 = vmatprep.subr.mxu1 (%p111_p1), %v2049_v30 }
 0x6cb   :  { %1745 = vmatpush3.xpose.msra.mxu1 (%p111_p1), %v2126_v23 }
 0x6cc   :  { %1784 = vmatprep.subr.mxu1 (%p111_p1), %v2049_v30 }
 0x6cf   : > { %v1931_v32 = vpop.eup %1930 }
 0x6d0   : > { %1870 = vpush %v1931_v32 }
 0x701   : > { %s1871_s18 = spop %1870 }
 0x702   : > { %v627_v44 = vstv %s1871_s18  ;;  %s2051_s18 = smov (%p111_p1), [#allocation8]  }
 0x703   : > { %v628_v36 = vmul.f32 %v627_v44, %v608_v63 }
 0x705   : > { %v629_v60 = vmul.f32 0.4, %v628_v36 }
 0x707   : > { %v630_v58 = vadd.f32 %v629_v60, %v566_v43 }
 0x709   : > { %v641_v24 = vrot.slane %v630_v58, %v640_v42  ;;  %113 = sbr.rel (!%p111_p1) target bundleno = 50 (0x32), region = 55 }
 0x70b   : > { %v2311_v51 = vsel %vm637_vm4, %v641_v24, %v636_v62  }
 0x70c   : > { %v2548_v26 = vmov %v2311_v51 }
 0x70d   : > { %v2549_v51 = vmov %v2548_v26  ;;  %650 = vxpose.xlu0.b32.start.end [1/1] (short) (%p111_p1), %v2548_v26, 128  ;;  %1688 = vmatprep.subr.mxu0 (%p111_p1), %v2548_v26  ;;  %v643_v38 = vmul.f32 (%p111_p1), %v2548_v26, %v2548_v26 }
 0x70e   :  { %1689 = vmatpush3.msra.mxu0 %v2548_v26 }
 0x70f   :  { %1749 = vmatprep.subr.mxu0 %v2049_v30  ;;  %v644_v32 = vrot.slane %v643_v38, 4 }
 0x711   :  { %v645_v44 = vadd.f32 %v644_v32, %v643_v38 }
 0x713   :  { %v646_v36 = vrot.slane %v645_v44, 2 }
 0x715   :  { %v647_v60 = vadd.f32 %v646_v36, %v645_v44 }
 0x717   :  { %v648_v61 = vrot.slane %v647_v60, 1 }
 0x719   :  { %v2375_v58 = vadd.f32 %v648_v61, %v647_v60 }
 0x71b   :  { %1747 = vmatmul.mubr.f32.vlgmr.msra.gmra.mxu1 %v2375_v58  ;;  %v1348_v1 = vmul.f32 %v2375_v58, %v2124_v18 }
 0x71c   :  { %1785 = vmatpush3.xpose.msra.mxu1 %v2119_v17  ;;  %1816 = vmatprep.mubr.msk.f32.mxu1 %vm2050_vm5, %v2049_v30 }
 0x71d   :  { %1786 = vmatprep.subr.mxu1 %v2049_v30 }
 0x720   :  { %1787 = vmatpush3.xpose.msra.mxu1 %v2117_v16 }
 0x721   :  { %1788 = vmatprep.subr.mxu1 %v2049_v30 }
 0x724   :  { %1789 = vmatpush3.xpose.msra.mxu1 %v2115_v15 }
 0x725   :  { %1790 = vmatprep.subr.mxu1 %v2049_v30 }
 0x728   :  { %1791 = vmatpush3.xpose.msra.mxu1 %v2113_v14 }
 0x729   :  { %1792 = vmatprep.subr.mxu1 %v2049_v30 }
 0x72c   :  { %1793 = vmatpush3.xpose.msra.mxu1 %v2111_v13 }
 0x72d   :  { %1794 = vmatprep.subr.mxu1 %v2049_v30 }
 0x730   :  { %1795 = vmatpush3.xpose.msra.mxu1 %v2109_v12 }
 0x731   :  { %1796 = vmatprep.subr.mxu1 %v2049_v30 }
 0x734   :  { %1797 = vmatpush3.xpose.msra.mxu1 %v2107_v11 }
 0x735   :  { %1798 = vmatprep.subr.mxu1 %v2049_v30 }
 0x738   :  { %1799 = vmatpush3.xpose.msra.mxu1 %v2105_v10 }
 0x739   :  { %1800 = vmatprep.subr.mxu1 %v2049_v30 }
 0x73c   :  { %1801 = vmatpush3.xpose.msra.mxu1 %v2103_v9 }
 0x73d   :  { %1802 = vmatprep.subr.mxu1 %v2049_v30 }
 0x740   :  { %1803 = vmatpush3.xpose.msra.mxu1 %v2101_v8 }
 0x741   :  { %1804 = vmatprep.subr.mxu1 %v2049_v30 }
 0x744   :  { %1805 = vmatpush3.xpose.msra.mxu1 %v2099_v7 }
 0x745   :  { %1806 = vmatprep.subr.mxu1 %v2049_v30 }
 0x748   :  { %1807 = vmatpush3.xpose.msra.mxu1 %v2097_v6 }
 0x749   :  { %1808 = vmatprep.subr.mxu1 %v2049_v30 }
 0x74c   :  { %1809 = vmatpush3.xpose.msra.mxu1 %v2095_v5 }
 0x74d   :  { %1810 = vmatprep.subr.mxu1 %v2049_v30 }
 0x750   :  { %1811 = vmatpush3.xpose.msra.mxu1 %v2093_v4 }
 0x751   :  { %1812 = vmatprep.subr.mxu1 %v2049_v30 }
 0x754   :  { %1813 = vmatpush3.xpose.msra.mxu1 %v2091_v3 }
 0x755   :  { %1814 = vmatprep.subr.mxu1 %v2049_v30 }
 0x758   :  { %1815 = vmatpush3.xpose.msra.mxu1 %v2089_v2 }
 0x789   :  { %v666_v43 = vpop.trf.xlu0 }
 0x78a   :  { %1690 = vmatprep.mubr.msk.f32.mxu0 %vm155_vm0, %v666_v43 }
 0x78d   :  { %v667_v31 = vpop.trf.xlu0 }
 0x78e   :  { %1691 = vmatmul.mubr.msk.f32.vlgmr.msra.gmra.mxu0 %vm155_vm0, %v667_v31 }
 0x791   :  { %v668_v51 = vpop.trf.xlu0 }
 0x792   :  { %1693 = vmatprep.mubr.msk.f32.mxu0 %vm155_vm0, %v668_v51 }
 0x795   :  { %v669_v56 = vpop.trf.xlu0 }
 0x796   :  { %1694 = vmatmul.mubr.msk.f32.gmra.mxu0 %vm155_vm0, %v669_v56 }
 0x799   :  { %v670_v19 = vpop.trf.xlu0 }
 0x79a   :  { %1696 = vmatprep.mubr.msk.f32.mxu0 %vm155_vm0, %v670_v19 }
 0x79d   :  { %v671_v59 = vpop.trf.xlu0 }
 0x79e   :  { %1697 = vmatmul.mubr.msk.f32.gmra.mxu0 %vm155_vm0, %v671_v59 }
 0x7a1   :  { %v672_v63 = vpop.trf.xlu0 }
 0x7a2   :  { %1699 = vmatprep.mubr.msk.f32.mxu0 %vm155_vm0, %v672_v63 }
 0x7a5   :  { %v673_v20 = vpop.trf.xlu0 }
 0x7a6   :  { %1700 = vmatmul.mubr.msk.f32.gmra.mxu0 %vm155_vm0, %v673_v20 }
 0x7a9   :  { %v674_v57 = vpop.trf.xlu0 }
 0x7aa   :  { %1702 = vmatprep.mubr.msk.f32.mxu0 %vm155_vm0, %v674_v57 }
 0x7ad   :  { %v675_v54 = vpop.trf.xlu0 }
 0x7ae   :  { %1703 = vmatmul.mubr.msk.f32.gmra.mxu0 %vm155_vm0, %v675_v54 }
 0x7b1   :  { %v676_v21 = vpop.trf.xlu0 }
 0x7b2   :  { %1705 = vmatprep.mubr.msk.f32.mxu0 %vm155_vm0, %v676_v21 }
 0x7b5   :  { %v677_v22 = vpop.trf.xlu0 }
 0x7b6   :  { %1706 = vmatmul.mubr.msk.f32.gmra.mxu0 %vm155_vm0, %v677_v22 }
 0x7b9   :  { %v678_v55 = vpop.trf.xlu0 }
 0x7ba   :  { %1708 = vmatprep.mubr.msk.f32.mxu0 %vm155_vm0, %v678_v55 }
 0x7bd   :  { %v679_v52 = vpop.trf.xlu0 }
 0x7be   :  { %1709 = vmatmul.mubr.msk.f32.gmra.mxu0 %vm155_vm0, %v679_v52 }
 0x7c1   :  { %v680_v25 = vpop.trf.xlu0 }
 0x7c2   :  { %1711 = vmatprep.mubr.msk.f32.mxu0 %vm155_vm0, %v680_v25 }
 0x7c5   :  { %v681_v53 = vpop.trf.xlu0 }
 0x7c6   :  { %1712 = vmatmul.mubr.msk.f32.gmra.mxu0 %vm155_vm0, %v681_v53 }
 0x7c7   :  { %1781 = vmatprep.mubr.msk.f32.mxu0 %vm2050_vm5, %v2049_v30 }
 0x84e   :  { %v2397_v24 = vpop.f32.mrf.mxu0 }
 0x850   :  { %v2401_v62 = vpop.f32.mrf.mxu0 }
 0x856   :  { %v2404_v43 = vpop.f32.mrf.mxu0 }
 0x858   :  { %v2408_v31 = vpop.f32.mrf.mxu0 }
 0x85e   :  { %v1698_v51 = vpop.f32.mrf.mxu0 }
 0x860   :  { %v817_v56 = vpop.f32.mrf.mxu0 }
 0x866   :  { %v1701_v19 = vpop.f32.mrf.mxu0 }
 0x868   :  { %v827_v59 = vpop.f32.mrf.mxu0 }
 0x86e   :  { %v1704_v63 = vpop.f32.mrf.mxu0 }
 0x870   :  { %v837_v20 = vpop.f32.mrf.mxu0 }
 0x876   :  { %v1707_v57 = vpop.f32.mrf.mxu0 }
 0x878   :  { %v847_v54 = vpop.f32.mrf.mxu0 }
 0x87e   :  { %v1710_v21 = vpop.f32.mrf.mxu0 }
 0x87f   :  { %v2432_v32 = vmul.f32 %v1710_v21, %v2152_v48  ;;  %v957_v48 = vmul.f32 %v847_v54, %v2146_v45 }
 0x880   :  { %v857_v22 = vpop.f32.mrf.mxu0 }
 0x886   :  { %v1713_v55 = vpop.f32.mrf.mxu0 }
 0x887   :  { %v2423_v52 = vmul.f32 %v1713_v55, %v2156_v50  ;;  %v977_v50 = vadd.f32 %v2432_v32, %v2115_v15  ;;  %v956_v15 = vmul.f32 %v1704_v63, %v2144_v41 }
 0x888   :  { %v867_v25 = vpop.f32.mrf.mxu0 }
 0x889   :  { %v979_v53 = vadd.f32 %v2423_v52, %v2119_v17  ;;  %v2428_v38 = vmul.f32 %v867_v25, %v2154_v49  ;;  %v959_v17 = vmul.f32 %v857_v22, %v2150_v47  ;;  %v958_v49 = vmul.f32 %v1707_v57, %v2148_v46 }
 0x88a   :  { %v974_v47 = vadd.f32 %v957_v48, %v2109_v12  ;;  %v973_v46 = vadd.f32 %v956_v15, %v2107_v11  ;;  %v953_v12 = vmul.f32 %v827_v59, %v2138_v35  ;;  %v952_v11 = vmul.f32 %v1698_v51, %v2136_v34 }
 0x88b   :  { %1750 = vmatpush3.xpose.msra.mxu0 %v979_v53  ;;  %v978_v44 = vadd.f32 %v2428_v38, %v2117_v16  ;;  %v976_v36 = vadd.f32 %v959_v17, %v2113_v14  ;;  %v975_v16 = vadd.f32 %v958_v49, %v2111_v13  ;;  %v955_v14 = vmul.f32 %v837_v20, %v2142_v40 }
 0x88c   :  { %1751 = vmatprep.subr.mxu0 %v2049_v30  ;;  %v954_v13 = vmul.f32 %v1701_v19, %v2140_v39  ;;  %v970_v40 = vadd.f32 %v953_v12, %v2101_v8  ;;  %v969_v39 = vadd.f32 %v952_v11, %v2099_v7  ;;  %v949_v34 = vmul.f32 %v2408_v31, %v2130_v28 }
 0x88d   :  { %v972_v45 = vadd.f32 %v955_v14, %v2105_v10  ;;  %v951_v10 = vmul.f32 %v817_v56, %v2134_v33  ;;  %v948_v7 = vmul.f32 %v2397_v24, %v2128_v27 }
 0x88e   :  { %v971_v41 = vadd.f32 %v954_v13, %v2103_v9  ;;  %v950_v9 = vmul.f32 %v2404_v43, %v2132_v29  ;;  %v966_v33 = vadd.f32 %v949_v34, %v2093_v4  ;;  %v947_v29 = vmul.f32 %v2401_v62, %v2126_v23 }
 0x88f   :  { %1752 = vmatpush3.xpose.msra.mxu0 %v978_v44  ;;  %v968_v35 = vadd.f32 %v951_v10, %v2097_v6  ;;  %v965_v6 = vadd.f32 %v948_v7, %v2091_v3 }
 0x890   :  { %1753 = vmatprep.subr.mxu0 %v2049_v30  ;;  %v967_v8 = vadd.f32 %v950_v9, %v2095_v5  ;;  %v964_v5 = vadd.f32 %v947_v29, %v2089_v2  ;;  %v942_v2 = vpop.f32.mrf.mxu1 }
 0x891   :  { %v946_v4 = vsub.f32 0.0, %v942_v2 }
 0x892   :  { %v1748_v3 = vpop.f32.mrf.mxu1 }
 0x893   :  { %1754 = vmatpush3.xpose.msra.mxu0 %v977_v50  ;;  %v963_v23 = vadd.f32 %v946_v4, %v2124_v18 }
 0x894   :  { %1755 = vmatprep.subr.mxu0 %v2049_v30 }
 0x895   :  { %v2506_v27 = vrot.slane %v963_v23, %v2283_v37 }
 0x897   :  { %1756 = vmatpush3.xpose.msra.mxu0 %v976_v36  ;;  %v984_v28 = vmul.f32 %v2506_v27, %v2548_v26 }
 0x898   :  { %1757 = vmatprep.subr.mxu0 %v2049_v30 }
 0x89b   :  { %1758 = vmatpush3.xpose.msra.mxu0 %v975_v16 }
 0x89c   :  { %1759 = vmatprep.subr.mxu0 %v2049_v30 }
 0x89f   :  { %1760 = vmatpush3.xpose.msra.mxu0 %v974_v47 }
 0x8a0   :  { %1761 = vmatprep.subr.mxu0 %v2049_v30 }
 0x8a3   :  { %1762 = vmatpush3.xpose.msra.mxu0 %v973_v46 }
 0x8a4   :  { %1763 = vmatprep.subr.mxu0 %v2049_v30 }
 0x8a7   :  { %1764 = vmatpush3.xpose.msra.mxu0 %v972_v45 }
 0x8a8   :  { %1765 = vmatprep.subr.mxu0 %v2049_v30 }
 0x8ab   :  { %1766 = vmatpush3.xpose.msra.mxu0 %v971_v41 }
 0x8ac   :  { %1767 = vmatprep.subr.mxu0 %v2049_v30 }
 0x8af   :  { %1768 = vmatpush3.xpose.msra.mxu0 %v970_v40 }
 0x8b0   :  { %1769 = vmatprep.subr.mxu0 %v2049_v30 }
 0x8b3   :  { %1770 = vmatpush3.xpose.msra.mxu0 %v969_v39 }
 0x8b4   :  { %1771 = vmatprep.subr.mxu0 %v2049_v30 }
 0x8b7   :  { %1772 = vmatpush3.xpose.msra.mxu0 %v968_v35  ;;  %v1093_v35 = vmul.f32 0.6, %v2548_v26 }
 0x8b8   :  { %1773 = vmatprep.subr.mxu0 %v2049_v30 }
 0x8bb   :  { %1774 = vmatpush3.xpose.msra.mxu0 %v967_v8 }
 0x8bc   :  { %1775 = vmatprep.subr.mxu0 %v2049_v30 }
 0x8bf   :  { %1776 = vmatpush3.xpose.msra.mxu0 %v966_v33 }
 0x8c0   :  { %1777 = vmatprep.subr.mxu0 %v2049_v30 }
 0x8c3   :  { %1778 = vmatpush3.xpose.msra.mxu0 %v965_v6 }
 0x8c4   :  { %1779 = vmatprep.subr.mxu0 %v2049_v30 }
 0x8c7   :  { %1780 = vmatpush3.xpose.msra.mxu0 %v964_v5 }
 0x8c8   :  { %1819 = vmatprep.subr.mxu0 %v2049_v30 }
 0x8ca   :  { %1782 = vmatmul.mubr.f32.vlgmr.msra.gmra.mxu0 %v2548_v26 }
 0x8cb   :  { %1820 = vmatpush3.xpose.msra.mxu0 %v2423_v52  ;;  %1851 = vmatprep.mubr.msk.f32.mxu0 %vm2050_vm5, %v2049_v30 }
 0x8cc   :  { %1821 = vmatprep.subr.mxu0 %v2049_v30 }
 0x8cf   :  { %1822 = vmatpush3.xpose.msra.mxu0 %v2428_v38 }
 0x8d0   :  { %1823 = vmatprep.subr.mxu0 %v2049_v30 }
 0x8d3   :  { %1824 = vmatpush3.xpose.msra.mxu0 %v2432_v32 }
 0x8d4   :  { %1825 = vmatprep.subr.mxu0 %v2049_v30 }
 0x8d7   :  { %1826 = vmatpush3.xpose.msra.mxu0 %v959_v17 }
 0x8d8   :  { %1827 = vmatprep.subr.mxu0 %v2049_v30 }
 0x8db   :  { %1828 = vmatpush3.xpose.msra.mxu0 %v958_v49 }
 0x8dc   :  { %1829 = vmatprep.subr.mxu0 %v2049_v30 }
 0x8df   :  { %1830 = vmatpush3.xpose.msra.mxu0 %v957_v48 }
 0x8e0   :  { %1831 = vmatprep.subr.mxu0 %v2049_v30 }
 0x8e3   :  { %1832 = vmatpush3.xpose.msra.mxu0 %v956_v15 }
 0x8e4   :  { %1833 = vmatprep.subr.mxu0 %v2049_v30 }
 0x8e7   :  { %1834 = vmatpush3.xpose.msra.mxu0 %v955_v14 }
 0x8e8   :  { %1835 = vmatprep.subr.mxu0 %v2049_v30 }
 0x8eb   :  { %1836 = vmatpush3.xpose.msra.mxu0 %v954_v13 }
 0x8ec   :  { %1837 = vmatprep.subr.mxu0 %v2049_v30 }
 0x8ef   :  { %1838 = vmatpush3.xpose.msra.mxu0 %v953_v12 }
 0x8f0   :  { %1839 = vmatprep.subr.mxu0 %v2049_v30 }
 0x8f3   :  { %1840 = vmatpush3.xpose.msra.mxu0 %v952_v11 }
 0x8f4   :  { %1841 = vmatprep.subr.mxu0 %v2049_v30 }
 0x8f7   :  { %1842 = vmatpush3.xpose.msra.mxu0 %v951_v10 }
 0x8f8   :  { %1843 = vmatprep.subr.mxu0 %v2049_v30 }
 0x8fb   :  { %1844 = vmatpush3.xpose.msra.mxu0 %v950_v9 }
 0x8fc   :  { %1845 = vmatprep.subr.mxu0 %v2049_v30 }
 0x8ff   :  { %1846 = vmatpush3.xpose.msra.mxu0 %v949_v34 }
 0x900   :  { %1847 = vmatprep.subr.mxu0 %v2049_v30 }
 0x903   :  { %1848 = vmatpush3.xpose.msra.mxu0 %v948_v7 }
 0x904   :  { %1849 = vmatprep.subr.mxu0 %v2049_v30 }
 0x907   :  { %1850 = vmatpush3.xpose.msra.mxu0 %v947_v29 }
 0x98a   :  { %v1051_v60 = vpop.f32.mrf.mxu0 }
 0x98b   :  { %v2510_v61 = vadd.f32 %v1051_v60, %v984_v28 }
 0x98c   :  { %v1783_v24 = vpop.f32.mrf.mxu0 }
 0x98d   :  { %v1055_v62 = vmul.f32 0.005342458, %v2510_v61 }
 0x98f   :  { %v1056_v43 = vsub.f32 %v2548_v26, %v1055_v62 }
 0x991   :  { %v1057_v31 = vmul.f32 %v1056_v43, %v1056_v43 }
 0x993   :  { %v1059_v30 = vsel %vm531_vm2, %v1057_v31, 0.0  ;;  %v1096_v53 = vrot.slane %v1057_v31, 1 }
 0x994   :  { %1060 = vadd.xlane.f32.xlu0 %v1059_v30 }
 0x995   :  { %v1098_v38 = vsel %vm531_vm2, %v1096_v53, 0.0 }
 0xa1d   :  { %v1061_v51 = vpop.xlane.xlu0 %1060 }
 0xa1e   :  { %v1062_v56 = vrot.slane %v1061_v51, 4 }
 0xa20   :  { %v1063_v19 = vadd.f32 %v1062_v56, %v1061_v51 }
 0xa22   :  { %v1064_v59 = vrot.slane %v1063_v19, 2 }
 0xa24   :  { %v1065_v63 = vadd.f32 %v1064_v59, %v1063_v19  ;;  %v1170_v19 = vmul.f32 %v2510_v61, %v2548_v26 }
 0xa26   :  { %v1066_v20 = vrot.slane %v1065_v63, 1 }
 0xa28   :  { %v1067_v57 = vadd.f32 %v1066_v20, %v1065_v63 }
 0xa2a   :  { %1872 = vpush %v1067_v57 }
 0xa5b   :  { %s1873_s19 = spop %1872 }
 0xa5c   :  { %s1069_s20 = smul.f32 0.09375, %s1873_s19  ;;  %s1406_s19 = sshll.u32 %s2051_s18, 4  ;;  %s1407_s19 = int_to_ptr.vmem [resolvable:$true] %s1406_s19 }
 0xa5d   :  { %p2005_p3 = scmp.lt.s32.totalorder %s1407_s19, %s1407_s19 }
 0xa5e   :  { %v1070_v54 = vstv %s1069_s20  ;;  %s2000_s20 = scalar_lea.vmem %s1407_s19, 16 }
 0xa5f   :  { %1932 = vrsqrt.f32 %v1070_v54  ;;  %p2001_p2 = scmp.ne.s32.totalorder %s1407_s19, %s2000_s20 }
 0xa6c   :  { %v1933_v21 = vpop.eup %1932 }
 0xa6d   :  { %1874 = vpush %v1933_v21 }
 0xa9e   :  { %s1875_s21 = spop %1874 }
 0xa9f   :  { %v1073_v22 = vstv %s1875_s21  ;;  %s2004_s21 = scalar_lea.vmem %s1407_s19, 32 }
 0xaa0   :  { %v1074_v55 = vmul.f32 %v1073_v22, %v1056_v43  ;;  %p2006_p4 = scmp.lt.s32.totalorder %s2004_s21, %s2000_s20 }
 0xaa2   :  { %v1075_v52 = vmul.f32 %v1074_v55, %v1074_v55  ;;  %p2007_p5 = por %p2006_p4, %p2005_p3 }
 0xaa4   :  { %v1076_v25 = vsel %vm531_vm2, %v1075_v52, 0.0  ;;  %p2008_p6 = pnand %p2007_p5, %p2001_p2 }
 0xaa5   :  { %1077 = vadd.xlane.f32.xlu1 %v1076_v25 }
 0xaa9   :  { %1099 = vadd.xlane.f32.xlu1 %v1098_v38 }
 0xb2e   :  { %v1078_v32 = vpop.xlane.xlu1 %1077 }
 0xb2f   :  { %v1079_v44 = vrot.slane %v1078_v32, 4 }
 0xb31   :  { %v1080_v50 = vadd.f32 %v1079_v44, %v1078_v32 }
 0xb32   :  { %v1100_v48 = vpop.xlane.xlu1 %1099 }
 0xb33   :  { %v1081_v17 = vrot.slane %v1080_v50, 2  ;;  %v1101_v15 = vrot.slane %v1100_v48, 4 }
 0xb35   :  { %v1082_v49 = vadd.f32 %v1081_v17, %v1080_v50  ;;  %v1102_v47 = vadd.f32 %v1101_v15, %v1100_v48 }
 0xb37   :  { %v1083_v36 = vrot.slane %v1082_v49, 1  ;;  %v1103_v14 = vrot.slane %v1102_v47, 2 }
 0xb39   :  { %v1084_v16 = vadd.f32 %v1083_v36, %v1082_v49  ;;  %v1104_v13 = vadd.f32 %v1103_v14, %v1102_v47 }
 0xb3b   :  { %1876 = vpush %v1084_v16  ;;  %v1105_v45 = vrot.slane %v1104_v13, 1 }
 0xb3d   :  { %v1106_v12 = vadd.f32 %v1105_v45, %v1104_v13 }
 0xb6c   :  { %s1877_s22 = spop %1876 }
 0xb6d   :  { %s1086_s23 = smul.f32 0.09375, %s1877_s22 }
 0xb6f   :  { %v1087_v46 = vstv %s1086_s23 }
 0xb70   :  { %1934 = vrcp.f32 %v1087_v46 }
 0xb7d   :  { %v1935_v41 = vpop.eup %1934 }
 0xb7e   :  { %1878 = vpush %v1935_v41 }
 0xb7f   :  { %1880 = vpush %v1106_v12 }
 0xbaf   :  { %s1879_s24 = spop %1878 }
 0xbb0   :  { %s1881_s25 = spop %1880  ;;  %v1090_v39 = vstv %s1879_s24 }
 0xbb1   :  { %s1108_s26 = smul.f32 0.09375, %s1881_s25  ;;  %v1091_v10 = vmul.f32 %v1090_v39, %v1074_v55 }
 0xbb3   :  { %v1109_v11 = vstv %s1108_s26  ;;  %v1092_v9 = vmul.f32 0.4, %v1091_v10  ;;  %v1349_v10 = vsel %vm531_vm2, %v1348_v1, 0.0 }
 0xbb4   :  { %1936 = vrsqrt.f32 %v1109_v11 }
 0xbb5   :  { %v1094_v7 = vadd.f32 %v1093_v35, %v1092_v9 }
 0xbb7   :  { %v1162_v50 = vrot.slane %v1094_v7, %v2283_v37 }
 0xbb9   :  { %v1163_v36 = vsel %vm631_vm3, %v1162_v50, %v2548_v26 }
 0xbc1   :  { %v1937_v40 = vpop.eup %1936 }
 0xbc2   :  { %1882 = vpush %v1937_v40 }
 0xbf3   :  { %s1883_s27 = spop %1882 }
 0xbf4   :  { %v1112_v8 = vstv %s1883_s27 }
 0xbf5   :  { %v1113_v34 = vmul.f32 %v1112_v8, %v1056_v43 }
 0xbf7   :  { %v1115_v33 = vrot.slane %v1113_v34, 1 }
 0xbf9   :  { %v1117_v6 = vmul.f32 %v1115_v33, %v1094_v7 }
 0xbfb   :  { %v1118_v29 = vsel %vm531_vm2, %v1117_v6, 0.0 }
 0xbfc   :  { %1119 = vadd.xlane.f32.xlu1 %v1118_v29 }
 0xc85   :  { %v1120_v5 = vpop.xlane.xlu1 %1119 }
 0xc86   :  { %v1121_v2 = vrot.slane %v1120_v5, 4 }
 0xc88   :  { %v1122_v3 = vadd.f32 %v1121_v2, %v1120_v5 }
 0xc8a   :  { %v1123_v4 = vrot.slane %v1122_v3, 2 }
 0xc8c   :  { %v1124_v23 = vadd.f32 %v1123_v4, %v1122_v3 }
 0xc8e   :  { %v1125_v28 = vrot.slane %v1124_v23, 1 }
 0xc90   :  { %v1126_v60 = vadd.f32 %v1125_v28, %v1124_v23 }
 0xc92   :  { %1884 = vpush %v1126_v60 }
 0xcc3   :  { %s1885_s28 = spop %1884 }
 0xcc4   :  { %s1128_s29 = smul.f32 0.09375, %s1885_s28 }
 0xcc6   :  { %v1129_v24 = vstv %s1128_s29 }
 0xcc7   :  { %v1130_v62 = vmul.f32 %v1129_v24, %v1094_v7 }
 0xcc9   :  { %v1133_v31 = vrot.slane %v1130_v62, 7 }
 0xccb   :  { %v1135_v43 = vsub.f32 %v1113_v34, %v1133_v31 }
 0xccd   :  { %v1136_v30 = vmul.f32 %v1135_v43, %v1135_v43 }
 0xccf   :  { %v1138_v51 = vrot.slane %v1136_v30, 1 }
 0xcd1   :  { %v1140_v56 = vsel %vm531_vm2, %v1138_v51, 0.0 }
 0xcd2   :  { %1141 = vadd.xlane.f32.xlu1 %v1140_v56 }
 0xcd6   :  { %1171 = vadd.xlane.f32.xlu1 %v1170_v19 }
 0xd5b   :  { %v1142_v59 = vpop.xlane.xlu1 %1141 }
 0xd5c   :  { %v1143_v63 = vrot.slane %v1142_v59, 4 }
 0xd5e   :  { %v1144_v20 = vadd.f32 %v1143_v63, %v1142_v59 }
 0xd5f   :  { %v1172_v57 = vpop.xlane.xlu1 %1171 }
 0xd60   :  { %v1145_v54 = vrot.slane %v1144_v20, 2  ;;  %v1173_v21 = vmul.f32 0.09375, %v1172_v57 }
 0xd62   :  { %v1175_v22 = vsel %vm1174_vm6, %v1173_v21, 0.0  ;;  %v1146_v55 = vadd.f32 %v1145_v54, %v1144_v20 }
 0xd63   :  { %1176 = vadd.xlane.f32.xlu1 %v1175_v22 }
 0xd64   :  { %v1147_v52 = vrot.slane %v1146_v55, 1 }
 0xd66   :  { %v1148_v25 = vadd.f32 %v1147_v52, %v1146_v55 }
 0xd68   :  { %1886 = vpush %v1148_v25 }
 0xd99   :  { %s1887_s1 = spop %1886 }
 0xd9a   :  { %s1150_s30 = smul.f32 0.09375, %s1887_s1 }
 0xd9c   :  { %v1151_v53 = vstv %s1150_s30 }
 0xd9d   :  { %1938 = vrcp.f32 %v1151_v53 }
 0xdaa   :  { %v1939_v38 = vpop.eup %1938 }
 0xdab   :  { %1888 = vpush %v1939_v38 }
 0xddc   :  { %s1889_s0 = spop %1888 }
 0xddd   :  { %v1154_v61 = vstv %s1889_s0 }
 0xdde   :  { %v1155_v32 = vmul.f32 %v1154_v61, %v1135_v43  ;;  %v1375_v43 = vand.u32 127, %v106_v0 }
 0xde0   :  { %v1156_v44 = vmul.f32 0.4, %v1155_v32  ;;  %vm1376_vm7 = vcmp.eq.s32.totalorder %v1375_v43, 0  ;;  %vm1379_vm8 = vcmp.eq.s32.totalorder %v1375_v43, 1  ;;  %vm1383_vm9 = vcmp.eq.s32.totalorder %v1375_v43, 2 }
 0xde1   :  { %vm1387_vm10 = vcmp.eq.s32.totalorder %v1375_v43, 3  ;;  %vm1391_vm11 = vcmp.eq.s32.totalorder %v1375_v43, 4  ;;  %vm1395_vm12 = vcmp.eq.s32.totalorder %v1375_v43, 5 }
 0xde2   :  { %v1157_v17 = vadd.f32 %v1156_v44, %v1093_v35 }
 0xde4   :  { %v1168_v49 = vrot.slane %v1157_v17, %v640_v42 }
 0xde6   :  { %v1169_v16 = vsel %vm637_vm4, %v1168_v49, %v1163_v36 }
 0xde7   :  { %1817 = vmatmul.mubr.f32.vlgmr.msra.gmra.mxu1 %v1169_v16  ;;  %1852 = vmatmul.mubr.f32.vlgmr.msra.gmra.mxu0 %v1169_v16  ;;  %v1266_v45 = vmul.f32 %v1169_v16, %v2506_v27 }
 0xdec   :  { %v1177_v48 = vpop.xlane.xlu1 %1176 }
 0xded   :  { %v1178_v15 = vrot.slane %v1177_v48, 4 }
 0xdef   :  { %v1179_v47 = vadd.f32 %v1178_v15, %v1177_v48 }
 0xdf1   :  { %v1180_v46 = vrot.slane %v1179_v47, 2 }
 0xdf3   :  { %v1181_v14 = vadd.f32 %v1180_v46, %v1179_v47 }
 0xdf5   :  { %v1182_v13 = vrot.slane %v1181_v14, 1 }
 0xdf7   :  { %v1183_v37 = vadd.f32 %v1182_v13, %v1181_v14 }
 0xdf9   :  { %1890 = vpush %v1183_v37 }
 0xe2a   :  { %s2534_s3 = spop %1890 }
 0xe2b   :  { %v1396_v55 = vstv %s2534_s3 }
 0xe2c   :  { %v1397_v53 = vsel %vm1395_vm12, %v1396_v55, 0.0 }
 0xea7   :  { %v1251_v42 = vpop.f32.mrf.mxu1  ;;  %v1333_v41 = vpop.f32.mrf.mxu0 }
 0xea8   :  { %v1255_v12 = vmul.f32 %v1251_v42, %v1169_v16  ;;  %v1334_v11 = vadd.f32 %v1333_v41, %v1266_v45 }
 0xea9   :  { %v1818_v26 = vpop.f32.mrf.mxu1  ;;  %v1853_v40 = vpop.f32.mrf.mxu0 }
 0xeaa   :  { %1256 = vadd.xlane.f32.xlu1 %v1255_v12  ;;  %v1337_v39 = vmul.f32 %v1334_v11, %v1169_v16 }
 0xeae   :  { %1338 = vadd.xlane.f32.xlu1 %v1337_v39 }
 0xeb2   :  { %1350 = vadd.xlane.f32.xlu1 %v1349_v10 }
 0xf33   :  { %v1257_v9 = vpop.xlane.xlu1 %1256 }
 0xf34   :  { %v1258_v35 = vrot.slane %v1257_v9, 4 }
 0xf36   :  { %v1259_v8 = vadd.f32 %v1258_v35, %v1257_v9 }
 0xf37   :  { %v1339_v34 = vpop.xlane.xlu1 %1338 }
 0xf38   :  { %v1260_v27 = vrot.slane %v1259_v8, 2  ;;  %v1340_v7 = vrot.slane %v1339_v34, 4 }
 0xf3a   :  { %v1341_v33 = vadd.f32 %v1340_v7, %v1339_v34  ;;  %v1261_v6 = vadd.f32 %v1260_v27, %v1259_v8 }
 0xf3b   :  { %v1351_v29 = vpop.xlane.xlu1 %1350 }
 0xf3c   :  { %v1342_v5 = vrot.slane %v1341_v33, 2  ;;  %v1352_v2 = vrot.slane %v1351_v29, 4  ;;  %v1262_v3 = vrot.slane %v1261_v6, 1 }
 0xf3e   :  { %v1353_v4 = vadd.f32 %v1352_v2, %v1351_v29  ;;  %v1263_v23 = vadd.f32 %v1262_v3, %v1261_v6  ;;  %v1343_v18 = vadd.f32 %v1342_v5, %v1341_v33 }
 0xf40   :  { %v1354_v58 = vrot.slane %v1353_v4, 2  ;;  %1892 = vpush %v1263_v23  ;;  %v1344_v28 = vrot.slane %v1343_v18, 1 }
 0xf42   :  { %v1355_v60 = vadd.f32 %v1354_v58, %v1353_v4  ;;  %v1345_v24 = vadd.f32 %v1344_v28, %v1343_v18 }
 0xf44   :  { %1894 = vpush %v1345_v24  ;;  %v1356_v62 = vrot.slane %v1355_v60, 1 }
 0xf46   :  { %v1357_v31 = vadd.f32 %v1356_v62, %v1355_v60 }
 0xf48   :  { %1896 = vpush %v1357_v31 }
 0xf71   :  { %s1893_s2 = spop %1892 }
 0xf72   :  { %s1265_s5 = smul.f32 0.09375, %s1893_s2 }
 0xf74   :  { %s1363_s6 = sadd.f32 %s2534_s3, %s1265_s5  ;;  %v1384_v51 = vstv %s1265_s5 }
 0xf75   :  { %s1895_s7 = spop %1894  ;;  %v1385_v57 = vsel %vm1383_vm9, %v1384_v51, 0.0 }
 0xf76   :  { %s1366_s10 = smul.f32 0.5, %s1363_s6 }
 0xf77   :  { %s1347_s12 = smul.f32 0.09375, %s1895_s7 }
 0xf79   :  { %s1897_s8 = spop %1896 }
 0xf7a   :  { %s1359_s9 = smul.f32 0.09375, %s1897_s8 }
 0xf7c   :  { %s1362_s11 = smul.f32 0.5, %s1359_s9 }
 0xf7e   :  { %s1368_s13 = smul.f32 2.0, %s1362_s11  ;;  %s1367_s14 = sadd.f32 %s1366_s10, %s1362_s11  ;;  %v1388_v20 = vstv %s1362_s11 }
 0xf7f   :  { %v1389_v22 = vsel %vm1387_vm10, %v1388_v20, 0.0 }
 0xf80   :  { %s1369_s15 = ssub.f32 %s1347_s12, %s1368_s13  ;;  %v1380_v30 = vstv %s1367_s14 }
 0xf81   :  { %v1381_v59 = vsel %vm1379_vm8, %v1380_v30, 0.0 }
 0xf82   :  { %s1372_s16 = smul.f32 0.5, %s1369_s15  ;;  %v1392_v21 = vstv %s1369_s15 }
 0xf83   :  { %v1393_v52 = vsel %vm1391_vm11, %v1392_v21, 0.0 }
 0xf84   :  { %s1373_s17 = ssub.f32 %s2534_s3, %s1372_s16 }
 0xf86   :  { %v1377_v56 = vstv %s1373_s17 }
 0xf87   :  { %v1378_v19 = vsel %vm1376_vm7, %v1377_v56, 0.0 }
 0xf88   :  { %v1382_v63 = vadd.f32 %v1381_v59, %v1378_v19 }
 0xf8a   :  { %v1386_v54 = vadd.f32 %v1385_v57, %v1382_v63 }
 0xf8c   :  { %v1390_v0 = vadd.f32 %v1389_v22, %v1386_v54 }
 0xf8e   :  { %v1394_v25 = vadd.f32 %v1393_v52, %v1390_v0 }
 0xf90   :  { %v1398_v38 = vadd.f32 %v1397_v53, %v1394_v25 }
 0xf92   :  { %1399 = vst [vmem:[#allocation8] sm:$0x1] %v1398_v38 }
 0xf93   :  { %2011 = shalt.err (!%p2008_p6)
}
 0xf94   :  { %1409 = dma.vmem_to_hbm [thread:$0]  %s1407_s19, 16, %s2547_s4, [#allocation4]  }
 0xf95   :  { %2032 = dma.done.wait [#allocation4], 16  }
 0xf96   :  { %2033 = vsyncadd [#allocation4], 4294967280 }
 0xf97   :  { %1413 = vsyncpa [#allocation3], 1 }
 0xf98   :  { %1414 = vsyncpa [#allocation6], 1 }
 0xf99   :  { %1415 = vsyncpa [#allocation4], 1 }

</bundles_post_ra>
